<compile_context>
chip_gen: v6e
topology: v6e:2x2x1
jax: 0.10.0
libtpu: 0.0.40
codegen_flags: <defaults>
</compile_context>

<pallas_src>
import numpy as np
import jax
import jax.numpy as jnp
from jax.experimental import pallas as pl
from jax.experimental.pallas import tpu as pltpu


def encoder_kernel(x_ref, w1_ref, b1_ref, w2_ref, w3g_ref, w3l_ref, b3_ref,
                   w4_ref, b4_ref, o_ref):
    Gb, N, _ = x_ref.shape
    M = Gb * N
    C = o_ref.shape[-1]

    x = x_ref[...]                                   # [Gb, N, 3]  f32
    w1 = w1_ref[...]                                 # [3, 128]    f32

    # --- first_conv: Conv1d(3,128,1) + BN(folded) + ReLU -------------------
    # K=3 contraction as three VPU broadcast-FMAs (no MXU pass).
    h = (x[:, :, 0:1] * w1[0:1, :]
         + x[:, :, 1:2] * w1[1:2, :]
         + x[:, :, 2:3] * w1[2:3, :]
         + b1_ref[...])                              # [Gb, N, 128]
    h = jnp.maximum(h, 0.0).reshape(M, 128)          # [M, 128]

    # --- Conv1d(128, 256, 1) on MXU; b2 is folded into b3 on the host -------
    # (exact: b2 is constant over N, max(x+b)=max(x)+b, and w3 is linear).
    f = jnp.dot(h.astype(jnp.bfloat16), w2_ref[...],
                preferred_element_type=jnp.float32)              # [M, 256]

    # --- global max over points, per group ---------------------------------
    g = jnp.max(f.reshape(Gb, N, 256), axis=1)       # [Gb, 256]

    # --- second_conv: Conv1d(512,512,1) + BN(folded) + ReLU ----------------
    # concat([global, local]) @ w3  ==  g @ w3[:256]  +  f @ w3[256:]
    # Bias (b3 + folded b2) is added only on the small per-group path.
    gproj = jnp.dot(g.astype(jnp.bfloat16), w3g_ref[...],
                    preferred_element_type=jnp.float32) + b3_ref[...]  # [Gb, 512]
    lproj = jnp.dot(f.astype(jnp.bfloat16), w3l_ref[...],
                    preferred_element_type=jnp.float32)                # [M, 512]
    h2 = jnp.maximum(lproj.reshape(Gb, N, 512) + gproj[:, None, :], 0.0)
    h2 = h2.reshape(M, 512)                          # [M, 512]

    # --- Conv1d(512, encoder_channel, 1); bias applied after the max --------
    out = jnp.dot(h2.astype(jnp.bfloat16), w4_ref[...],
                  preferred_element_type=jnp.float32)            # [M, C]

    # --- torch.max over points; [Gb, C] bias add (max(x+b)=max(x)+b) --------
    res = jnp.max(out.reshape(Gb, N, C), axis=1) + b4_ref[...]   # [Gb, C]
    o_ref[...] = res[None, :, :]


def _pick_group_tile(BG, N, max_points=4096):
    """Largest divisor of BG such that Gb*N <= max_points, capped so the grid
    has >= 2 steps (lets dimension_semantics=('parallel',) shard across both
    v7x TensorCores)."""
    gb = max(1, min(BG, max_points // max(N, 1)))
    if BG > 1:
        gb = max(1, min(gb, BG // 2))
    while BG % gb != 0:
        gb -= 1
    return gb


def encoder_forward(point_groups, params, group_tile=None):
    """point_groups: [B, G, N, 3] float32 -> [B, G, encoder_channel]."""
    w1, b1, w2, w3g, w3l, b3, w4, b4 = params
    B, G, N, _ = point_groups.shape
    C = w4.shape[1]
    BG = B * G

    # NOTE: x stays f32 (coordinate precision); its lane dim (3) is padded to
    # 128 in VMEM, but at <=4096 points/step that is ~2 MiB/buffer.
    x = point_groups.reshape(BG, N, 3).astype(jnp.float32)

    # Pad N to a sublane multiple by replicating a point (exact under max) so
    # the in-kernel (Gb,N,C)<->(M,C) reshapes and axis-1 maxes are layout-free.
    if N % 8 != 0:
        pad = (-N) % 8
        x = jnp.concatenate(
            [x, jnp.broadcast_to(x[:, :1, :], (BG, pad, 3))], axis=1)
        N = N + pad

    # ~4096 points/step, 48 MiB scoped VMEM: fits v7x (64 MiB/TC) and leaves
    # ample headroom on v5e/v6e (128 MiB).
    Gb = group_tile if group_tile is not None else _pick_group_tile(BG, N, 4096)
    assert BG % Gb == 0
    steps = BG // Gb

    # Weights/biases: full array per step, constant index_map (no re-DMA).
    const2d = lambda arr: pl.BlockSpec(arr.shape, lambda i: (0, 0))

    out = pl.pallas_call(
        encoder_kernel,
        out_shape=jax.ShapeDtypeStruct((steps, Gb, C), jnp.float32),
        grid_spec=pltpu.PrefetchScalarGridSpec(
            num_scalar_prefetch=0,
            grid=(steps,),
            in_specs=[
                pl.BlockSpec((Gb, N, 3), lambda i: (i, 0, 0)),   # points
                const2d(w1), const2d(b1),
                const2d(w2),
                const2d(w3g), const2d(w3l), const2d(b3),
                const2d(w4), const2d(b4),
            ],
            out_specs=pl.BlockSpec((1, Gb, C), lambda i: (i, 0, 0)),
        ),
        compiler_params=pltpu.CompilerParams(
            dimension_semantics=("parallel",),
            vmem_limit_bytes=48 << 20),
    )(x, w1, b1, w2, w3g, w3l, b3, w4, b4)

    return out.reshape(B, G, C)


def init_params(key, encoder_channel):
    """Returns (raw_params, kernel_params).

    raw_params: PyTorch-layout weights (for the pure-JAX reference).
    kernel_params: BN folded into conv1/conv3, w3 split into global/local
    halves, b2 folded through w3 into b3, MXU weights cast to bf16.
    """
    ks = jax.random.split(key, 12)
    eps = 1e-5

    def conv_init(kw, kb, cout, cin):
        bound = 1.0 / np.sqrt(cin)           # PyTorch Conv1d default init range
        w = jax.random.uniform(kw, (cout, cin), jnp.float32, -bound, bound)
        b = jax.random.uniform(kb, (cout,), jnp.float32, -bound, bound)
        return w, b

    # first_conv
    w1, b1 = conv_init(ks[0], ks[1], 128, 3)
    gamma1 = 1.0 + 0.1 * jax.random.normal(ks[2], (128,), jnp.float32)
    beta1 = 0.1 * jax.random.normal(ks[3], (128,), jnp.float32)
    w2, b2 = conv_init(ks[4], ks[5], 256, 128)

    # second_conv
    w3, b3 = conv_init(ks[6], ks[7], 512, 512)
    gamma2 = 1.0 + 0.1 * jax.random.normal(ks[8], (512,), jnp.float32)
    beta2 = 0.1 * jax.random.normal(ks[9], (512,), jnp.float32)
    w4, b4 = conv_init(ks[10], ks[11], encoder_channel, 512)

    raw = (w1, b1, gamma1, beta1, w2, b2, w3, b3, gamma2, beta2, w4, b4)

    # Fold eval-mode BN (running_mean=0, running_var=1) into conv1 / conv3.
    scale1 = gamma1 / jnp.sqrt(1.0 + eps)
    w1t = w1.T * scale1[None, :]             # [3, 128]
    b1f = (b1 * scale1 + beta1)[None, :]     # [1, 128]

    scale2 = gamma2 / jnp.sqrt(1.0 + eps)
    w3t = w3.T * scale2[None, :]             # [512 in, 512 out]
    b3f = b3 * scale2 + beta2                # [512]

    # Split: rows 0:256 act on the global feature, 256:512 on the local one
    # (matches torch.cat([global, local], dim=channels)).
    w3g = w3t[:256, :]
    w3l = w3t[256:, :]

    # Fold b2 through w3 (exact): f carries no bias in the kernel, so both the
    # global (via max, b2 const over N) and local paths gain b2 @ w3*.
    b3_tot = (b3f + b2 @ w3g + b2 @ w3l)[None, :]   # [1, 512]

    bf16 = jnp.bfloat16
    kernel_params = (w1t, b1f,                      # first conv stays f32 (VPU)
                     w2.T.astype(bf16),
                     w3g.astype(bf16), w3l.astype(bf16), b3_tot,
                     w4.T.astype(bf16), b4[None, :])
    return raw, kernel_params


def encoder_reference(point_groups, raw):
    """Pure-JAX f32 reference following the PyTorch forward (eval-mode BN)."""
    (w1, b1, gamma1, beta1, w2, b2, w3, b3, gamma2, beta2, w4, b4) = raw
    eps = 1e-5
    B, G, N, _ = point_groups.shape
    x = point_groups.reshape(B * G, N, 3).astype(jnp.float32)

    h = jnp.einsum('mnk,ck->mnc', x, w1) + b1                      # Conv1d(3,128,1)
    h = h / jnp.sqrt(1.0 + eps) * gamma1 + beta1                   # BN (eval, 0/1)
    h = jnp.maximum(h, 0.0)
    f = jnp.einsum('mnk,ck->mnc', h, w2) + b2                      # Conv1d(128,256,1)
    g = jnp.max(f, axis=1, keepdims=True)                          # [M,1,256]
    feat = jnp.concatenate(
        [jnp.broadcast_to(g, f.shape), f], axis=-1)                # [M,N,512]
    h2 = jnp.einsum('mnk,ck->mnc', feat, w3) + b3                  # Conv1d(512,512,1)
    h2 = h2 / jnp.sqrt(1.0 + eps) * gamma2 + beta2
    h2 = jnp.maximum(h2, 0.0)
    out = jnp.einsum('mnk,ck->mnc', h2, w4) + b4                   # Conv1d(512,C,1)
    return jnp.max(out, axis=1).reshape(B, G, -1)


if __name__ == "__main__":
    B, G, N = 2, 4, 32
    ENCODER_CHANNEL = 256

    key = jax.random.PRNGKey(0)
    k_in, k_par = jax.random.split(key)
    point_groups = jax.random.normal(k_in, (B, G, N, 3), jnp.float32)
    raw_params, kernel_params = init_params(k_par, ENCODER_CHANNEL)

    out = jax.block_until_ready(encoder_forward(point_groups, kernel_params))
    ref = jax.block_until_ready(encoder_reference(point_groups, raw_params))

    assert out.shape == (B, G, ENCODER_CHANNEL), out.shape
    # bf16 MXU inputs (f32 accumulation) vs f32 reference -> loosened tolerance.
    np.testing.assert_allclose(np.asarray(out), np.asarray(ref),
                               rtol=2e-2, atol=2e-2)
    print("KERNEL_OK")
</pallas_src>

<mosaic_0001>
module attributes {stable_mosaic.version = 11 : i64} {
  func.func @encoder_kernel(%arg0: i32, %arg1: memref<4x32x3xf32, #tpu.memory_space<vmem>>, %arg2: memref<3x128xf32, #tpu.memory_space<vmem>>, %arg3: memref<1x128xf32, #tpu.memory_space<vmem>>, %arg4: memref<128x256xbf16, #tpu.memory_space<vmem>>, %arg5: memref<256x512xbf16, #tpu.memory_space<vmem>>, %arg6: memref<256x512xbf16, #tpu.memory_space<vmem>>, %arg7: memref<1x512xf32, #tpu.memory_space<vmem>>, %arg8: memref<512x256xbf16, #tpu.memory_space<vmem>>, %arg9: memref<1x256xf32, #tpu.memory_space<vmem>>, %arg10: memref<1x4x256xf32, #tpu.memory_space<vmem>>) attributes {dimension_semantics = [#tpu.dimension_semantics<parallel>], iteration_bounds = array<i64: 2>, scalar_prefetch = 0 : i64, scratch_operands = 0 : i64, tpu.core_type = #tpu.core_type<tc>, window_params = [{transform_indices = @transform_0, window_bounds = array<i64: 4, 32, 3>}, {pipeline_mode = #tpu.pipeline_mode<synchronous>, transform_indices = @transform_1, window_bounds = array<i64: 3, 128>}, {pipeline_mode = #tpu.pipeline_mode<synchronous>, transform_indices = @transform_2, window_bounds = array<i64: 1, 128>}, {pipeline_mode = #tpu.pipeline_mode<synchronous>, transform_indices = @transform_3, window_bounds = array<i64: 128, 256>}, {pipeline_mode = #tpu.pipeline_mode<synchronous>, transform_indices = @transform_4, window_bounds = array<i64: 256, 512>}, {pipeline_mode = #tpu.pipeline_mode<synchronous>, transform_indices = @transform_5, window_bounds = array<i64: 256, 512>}, {pipeline_mode = #tpu.pipeline_mode<synchronous>, transform_indices = @transform_6, window_bounds = array<i64: 1, 512>}, {pipeline_mode = #tpu.pipeline_mode<synchronous>, transform_indices = @transform_7, window_bounds = array<i64: 512, 256>}, {pipeline_mode = #tpu.pipeline_mode<synchronous>, transform_indices = @transform_8, window_bounds = array<i64: 1, 256>}, {transform_indices = @transform_9, window_bounds = array<i64: 1, 4, 256>}]} {
    %c0 = arith.constant 0 : index
    %c0_0 = arith.constant 0 : index
    %c0_1 = arith.constant 0 : index
    %0 = vector.load %arg1[%c0, %c0_0, %c0_1] : memref<4x32x3xf32, #tpu.memory_space<vmem>>, vector<4x32x3xf32>
    %c0_2 = arith.constant 0 : index
    %c0_3 = arith.constant 0 : index
    %1 = vector.load %arg2[%c0_2, %c0_3] : memref<3x128xf32, #tpu.memory_space<vmem>>, vector<3x128xf32>
    %2 = vector.extract_strided_slice %0 {offsets = [0, 0, 0], sizes = [4, 32, 1], strides = [1, 1, 1]} : vector<4x32x3xf32> to vector<4x32x1xf32>
    %3 = vector.extract_strided_slice %1 {offsets = [0, 0], sizes = [1, 128], strides = [1, 1]} : vector<3x128xf32> to vector<1x128xf32>
    %4 = vector.shape_cast %3 : vector<1x128xf32> to vector<1x1x128xf32>
    %5 = vector.broadcast %2 : vector<4x32x1xf32> to vector<4x32x128xf32>
    %6 = vector.broadcast %4 : vector<1x1x128xf32> to vector<4x32x128xf32>
    %7 = arith.mulf %5, %6 : vector<4x32x128xf32>
    %8 = vector.extract_strided_slice %0 {offsets = [0, 0, 1], sizes = [4, 32, 1], strides = [1, 1, 1]} : vector<4x32x3xf32> to vector<4x32x1xf32>
    %9 = vector.extract_strided_slice %1 {offsets = [1, 0], sizes = [1, 128], strides = [1, 1]} : vector<3x128xf32> to vector<1x128xf32>
    %10 = vector.shape_cast %9 : vector<1x128xf32> to vector<1x1x128xf32>
    %11 = vector.broadcast %8 : vector<4x32x1xf32> to vector<4x32x128xf32>
    %12 = vector.broadcast %10 : vector<1x1x128xf32> to vector<4x32x128xf32>
    %13 = arith.mulf %11, %12 : vector<4x32x128xf32>
    %14 = arith.addf %7, %13 : vector<4x32x128xf32>
    %15 = vector.extract_strided_slice %0 {offsets = [0, 0, 2], sizes = [4, 32, 1], strides = [1, 1, 1]} : vector<4x32x3xf32> to vector<4x32x1xf32>
    %16 = vector.extract_strided_slice %1 {offsets = [2, 0], sizes = [1, 128], strides = [1, 1]} : vector<3x128xf32> to vector<1x128xf32>
    %17 = vector.shape_cast %16 : vector<1x128xf32> to vector<1x1x128xf32>
    %18 = vector.broadcast %15 : vector<4x32x1xf32> to vector<4x32x128xf32>
    %19 = vector.broadcast %17 : vector<1x1x128xf32> to vector<4x32x128xf32>
    %20 = arith.mulf %18, %19 : vector<4x32x128xf32>
    %21 = arith.addf %14, %20 : vector<4x32x128xf32>
    %c0_4 = arith.constant 0 : index
    %c0_5 = arith.constant 0 : index
    %22 = vector.load %arg3[%c0_4, %c0_5] : memref<1x128xf32, #tpu.memory_space<vmem>>, vector<1x128xf32>
    %23 = vector.shape_cast %22 : vector<1x128xf32> to vector<1x1x128xf32>
    %24 = vector.broadcast %23 : vector<1x1x128xf32> to vector<4x32x128xf32>
    %25 = arith.addf %21, %24 : vector<4x32x128xf32>
    %cst = arith.constant 0.000000e+00 : f32
    %26 = vector.broadcast %cst : f32 to vector<4x32x128xf32>
    %27 = arith.maximumf %25, %26 : vector<4x32x128xf32>
    %28 = vector.shape_cast %27 : vector<4x32x128xf32> to vector<128x128xf32>
    %29 = arith.truncf %28 : vector<128x128xf32> to vector<128x128xbf16>
    %c0_6 = arith.constant 0 : index
    %c0_7 = arith.constant 0 : index
    %30 = vector.load %arg4[%c0_6, %c0_7] : memref<128x256xbf16, #tpu.memory_space<vmem>>, vector<128x256xbf16>
    %cst_8 = arith.constant dense<0.000000e+00> : vector<128x256xf32>
    %31 = tpu.matmul %29, %30, %cst_8 {dimension_numbers = #tpu.dot_dimension_numbers<[1], [0], [0], [1], [0, 0, 1, 1], [], []>} : vector<128x128xbf16>, vector<128x256xbf16>, vector<128x256xf32> -> vector<128x256xf32>
    %32 = vector.shape_cast %31 : vector<128x256xf32> to vector<4x32x256xf32>
    %cst_9 = arith.constant dense<0xFF800000> : vector<4x256xf32>
    %33 = vector.multi_reduction <maximumf>, %32, %cst_9 [1] : vector<4x32x256xf32> to vector<4x256xf32>
    %34 = arith.truncf %33 : vector<4x256xf32> to vector<4x256xbf16>
    %c0_10 = arith.constant 0 : index
    %c0_11 = arith.constant 0 : index
    %35 = vector.load %arg5[%c0_10, %c0_11] : memref<256x512xbf16, #tpu.memory_space<vmem>>, vector<256x512xbf16>
    %cst_12 = arith.constant dense<0.000000e+00> : vector<4x512xf32>
    %36 = tpu.matmul %34, %35, %cst_12 {dimension_numbers = #tpu.dot_dimension_numbers<[1], [0], [0], [1], [0, 0, 1, 1], [], []>} : vector<4x256xbf16>, vector<256x512xbf16>, vector<4x512xf32> -> vector<4x512xf32>
    %c0_13 = arith.constant 0 : index
    %c0_14 = arith.constant 0 : index
    %37 = vector.load %arg7[%c0_13, %c0_14] : memref<1x512xf32, #tpu.memory_space<vmem>>, vector<1x512xf32>
    %38 = vector.broadcast %37 : vector<1x512xf32> to vector<4x512xf32>
    %39 = arith.addf %36, %38 : vector<4x512xf32>
    %40 = arith.truncf %31 : vector<128x256xf32> to vector<128x256xbf16>
    %c0_15 = arith.constant 0 : index
    %c0_16 = arith.constant 0 : index
    %41 = vector.load %arg6[%c0_15, %c0_16] : memref<256x512xbf16, #tpu.memory_space<vmem>>, vector<256x512xbf16>
    %cst_17 = arith.constant dense<0.000000e+00> : vector<128x512xf32>
    %42 = tpu.matmul %40, %41, %cst_17 {dimension_numbers = #tpu.dot_dimension_numbers<[1], [0], [0], [1], [0, 0, 1, 1], [], []>} : vector<128x256xbf16>, vector<256x512xbf16>, vector<128x512xf32> -> vector<128x512xf32>
    %43 = vector.shape_cast %42 : vector<128x512xf32> to vector<4x32x512xf32>
    %44 = vector.shape_cast %39 : vector<4x512xf32> to vector<4x1x512xf32>
    %45 = vector.broadcast %44 : vector<4x1x512xf32> to vector<4x32x512xf32>
    %46 = arith.addf %43, %45 : vector<4x32x512xf32>
    %cst_18 = arith.constant 0.000000e+00 : f32
    %47 = vector.broadcast %cst_18 : f32 to vector<4x32x512xf32>
    %48 = arith.maximumf %46, %47 : vector<4x32x512xf32>
    %49 = vector.shape_cast %48 : vector<4x32x512xf32> to vector<128x512xf32>
    %50 = arith.truncf %49 : vector<128x512xf32> to vector<128x512xbf16>
    %c0_19 = arith.constant 0 : index
    %c0_20 = arith.constant 0 : index
    %51 = vector.load %arg8[%c0_19, %c0_20] : memref<512x256xbf16, #tpu.memory_space<vmem>>, vector<512x256xbf16>
    %cst_21 = arith.constant dense<0.000000e+00> : vector<128x256xf32>
    %52 = tpu.matmul %50, %51, %cst_21 {dimension_numbers = #tpu.dot_dimension_numbers<[1], [0], [0], [1], [0, 0, 1, 1], [], []>} : vector<128x512xbf16>, vector<512x256xbf16>, vector<128x256xf32> -> vector<128x256xf32>
    %53 = vector.shape_cast %52 : vector<128x256xf32> to vector<4x32x256xf32>
    %cst_22 = arith.constant dense<0xFF800000> : vector<4x256xf32>
    %54 = vector.multi_reduction <maximumf>, %53, %cst_22 [1] : vector<4x32x256xf32> to vector<4x256xf32>
    %c0_23 = arith.constant 0 : index
    %c0_24 = arith.constant 0 : index
    %55 = vector.load %arg9[%c0_23, %c0_24] : memref<1x256xf32, #tpu.memory_space<vmem>>, vector<1x256xf32>
    %56 = vector.broadcast %55 : vector<1x256xf32> to vector<4x256xf32>
    %57 = arith.addf %54, %56 : vector<4x256xf32>
    %58 = vector.shape_cast %57 : vector<4x256xf32> to vector<1x4x256xf32>
    %c0_25 = arith.constant 0 : index
    %c0_26 = arith.constant 0 : index
    %c0_27 = arith.constant 0 : index
    %59 = vector.load %arg10[%c0_25, %c0_26, %c0_27] : memref<1x4x256xf32, #tpu.memory_space<vmem>>, vector<1x4x256xf32>
    tpu.vector_store %arg10[%c0_25, %c0_26, %c0_27], %58 {strides = array<i32>} : memref<1x4x256xf32, #tpu.memory_space<vmem>>, vector<1x4x256xf32>,
    return
  }
  func.func @transform_0(%arg0: i32) -> (i32, i32, i32) {
    %c0_i32 = arith.constant 0 : i32
    %c0_i32_0 = arith.constant 0 : i32
    %c0_i32_1 = arith.constant 0 : i32
    return %arg0, %c0_i32, %c0_i32_0 : i32, i32, i32
  }
  func.func @transform_1(%arg0: i32) -> (i32, i32) {
    %c0_i32 = arith.constant 0 : i32
    %c0_i32_0 = arith.constant 0 : i32
    %c0_i32_1 = arith.constant 0 : i32
    return %c0_i32, %c0_i32_0 : i32, i32
  }
  func.func @transform_2(%arg0: i32) -> (i32, i32) {
    %c0_i32 = arith.constant 0 : i32
    %c0_i32_0 = arith.constant 0 : i32
    %c0_i32_1 = arith.constant 0 : i32
    return %c0_i32, %c0_i32_0 : i32, i32
  }
  func.func @transform_3(%arg0: i32) -> (i32, i32) {
    %c0_i32 = arith.constant 0 : i32
    %c0_i32_0 = arith.constant 0 : i32
    %c0_i32_1 = arith.constant 0 : i32
    return %c0_i32, %c0_i32_0 : i32, i32
  }
  func.func @transform_4(%arg0: i32) -> (i32, i32) {
    %c0_i32 = arith.constant 0 : i32
    %c0_i32_0 = arith.constant 0 : i32
    %c0_i32_1 = arith.constant 0 : i32
    return %c0_i32, %c0_i32_0 : i32, i32
  }
  func.func @transform_5(%arg0: i32) -> (i32, i32) {
    %c0_i32 = arith.constant 0 : i32
    %c0_i32_0 = arith.constant 0 : i32
    %c0_i32_1 = arith.constant 0 : i32
    return %c0_i32, %c0_i32_0 : i32, i32
  }
  func.func @transform_6(%arg0: i32) -> (i32, i32) {
    %c0_i32 = arith.constant 0 : i32
    %c0_i32_0 = arith.constant 0 : i32
    %c0_i32_1 = arith.constant 0 : i32
    return %c0_i32, %c0_i32_0 : i32, i32
  }
  func.func @transform_7(%arg0: i32) -> (i32, i32) {
    %c0_i32 = arith.constant 0 : i32
    %c0_i32_0 = arith.constant 0 : i32
    %c0_i32_1 = arith.constant 0 : i32
    return %c0_i32, %c0_i32_0 : i32, i32
  }
  func.func @transform_8(%arg0: i32) -> (i32, i32) {
    %c0_i32 = arith.constant 0 : i32
    %c0_i32_0 = arith.constant 0 : i32
    %c0_i32_1 = arith.constant 0 : i32
    return %c0_i32, %c0_i32_0 : i32, i32
  }
  func.func @transform_9(%arg0: i32) -> (i32, i32, i32) {
    %c0_i32 = arith.constant 0 : i32
    %c0_i32_0 = arith.constant 0 : i32
    %c0_i32_1 = arith.constant 0 : i32
    return %arg0, %c0_i32, %c0_i32_0 : i32, i32, i32
  }
}

</mosaic_0001>

<bundles_post_ra>
// kernel: tpu_custom_call.1
= control target key start
LH: loop header
LB: loop body
LE: loop exit
PB: predicated region body
PF: predicated region fallthrough
CT: control target
= control target key end

     0   :  { %14 = vsyncpa [#allocation3], 0  ;;  %s4828_s0 = inlined_call_operand.vmem [shape: f32[8,32,3], index: 0, kind: input, shape index: {}]   ;;  %s4829_s1 = inlined_call_operand.vmem [shape: f32[3,128], index: 1, kind: input, shape index: {}]   ;;  %s4830_s2 = inlined_call_operand.vmem [shape: f32[1,128], index: 2, kind: input, shape index: {}]   ;;  %s4831_s3 = inlined_call_operand.vmem [shape: bf16[128,256], index: 3, kind: input, shape index: {}]   ;;  %s4832_s4 = inlined_call_operand.hbm [shape: bf16[256,512], index: 4, kind: input, shape index: {}]   ;;  %s4833_s5 = inlined_call_operand.hbm [shape: bf16[256,512], index: 5, kind: input, shape index: {}]   ;;  %s4834_s6 = inlined_call_operand.vmem [shape: f32[1,512], index: 6, kind: input, shape index: {}]   ;;  %s4835_s7 = inlined_call_operand.hbm [shape: bf16[512,256], index: 7, kind: input, shape index: {}]   ;;  %s4836_s8 = inlined_call_operand.vmem [shape: f32[1,256], index: 8, kind: input, shape index: {}]   ;;  %s4837_s9 = inlined_call_operand.hbm [shape: f32[2,4,256], index: 9, kind: output, shape index: {}]  }
   0x1   :  { %15 = vsyncpa [#allocation6], 0 }
   0x2   :  { %16 = vsyncpa [#allocation4], 0 }
   0x3   :  { %18 = vsyncpa [#allocation4 + $0x1], 0  ;;  %s4178_s30 = smov 0   ;;  %s4180_s10 = smov 0  }
   0x4   :  { %s4182_s11 = smov 0   ;;  %s4184_s12 = smov 0  }
   0x5 LB: > { %s4199_s13 = sadd.s32 4294967295, %s4114_s12   ;;  %s3288_s14 = sadd.s32 4294967294, %s4114_s12   ;;  %s4114_s12 = sphi %s4184_s12, %s4877_s12   ;;  %s4110_s11 = sphi %s4182_s11, %s4876_s11   ;;  %s4106_s10 = sphi %s4180_s10, %s4875_s10   ;;  %s4102_s30 = sphi %s4178_s30, %s4874_s30  }
   0x6   : > { %s4203_s15 = sadd.s32 1, %s4114_s12   ;;  %s225_s16 = sadd.s32 1, %s4110_s11 }
   0x7   : > { %s222_s17 = ssub.s32 %s4114_s12, %s4203_s15  ;;  %p235_p0 = scmp.ne.s32.totalorder %s4110_s11, %s4106_s10 }
   0x8   : > { %p223_p1 = scmp.eq.s32.totalorder %s222_s17, 0  ;;  %p236_p2 = scmp.eq.s32.totalorder %s4199_s13, 1 }
   0x9   : > { %p241_p3 = scmp.ne.s32.totalorder %s4106_s10, %s4102_s30  ;;  %p242_p4 = scmp.eq.s32.totalorder %s3288_s14, 1 }
   0xa   : > { %s4214_s18 = scalar_select %p223_p1, %s4110_s11, %s225_s16  }
   0xb   : > { %p4216_p5 = por %p236_p2, %p235_p0  ;;  %p4220_p6 = por %p242_p4, %p241_p3 }
   0xc   : > { %p3289_p7 = scmp.ge.s32.totalorder %s4114_s12, 1  ;;  %p249_p8 = scmp.lt.s32.totalorder %s4114_s12, 3 }
   0xd   : > { %s4848_s19 = scalar_select %p4216_p5, 1, 0 }
   0xe   : > { %s4849_s20 = scalar_select %p4220_p6, 1, 0 }
   0xf   : > { %p4838_p9 = scmp.eq.s32.totalorder %s4199_s13, 0  ;;  %p4227_p10 = pnand %p3289_p7, %p249_p8 }
  0x10   : > { %s4116_s22 = smov [#allocation5]   ;;  %s4117_s25 = smov [#allocation2]  }
  0x11   : > { %p3564_p11 = pneg %p4227_p10  ;;  %s283_s23 = sshll.u32 %s4116_s22, 4  ;;  %s284_s23 = int_to_ptr.vmem [resolvable:$true] %s283_s23 }
  0x12   : > { %s270_s26 = sshll.u32 %s4117_s25, 4  ;;  %s4118_s27 = smov [#allocation7]   ;;  %s271_s26 = int_to_ptr.vmem [resolvable:$true] %s270_s26 }
  0x13   : > { %p4235_p12 = pnand %p4838_p9, %p3564_p11  ;;  %s299_s28 = sshll.u32 %s4118_s27, 4  ;;  %s300_s28 = int_to_ptr.vmem [resolvable:$true] %s299_s28 }
  0x14   : > { %s3979_s29 = scalar_lea.vmem %s284_s23, 8192  ;;  %p3987_p3 = scmp.lt.s32.totalorder %s284_s23, %s284_s23 }
  0x15   : > { %p3970_p13 = pneg %p4235_p12  ;;  %p3980_p0 = scmp.ne.s32.totalorder %s284_s23, %s3979_s29 }
  0x16   : > { %p3988_p4 = scmp.lt.s32.totalorder %s3979_s29, %s3979_s29 }
  0x17   : > { %p3982_p1 = pnand %p3980_p0, %p3970_p13 }
  0x18   : > { %p3989_p7 = por %p3988_p4, %p3987_p3 }
  0x19   : > { %p3983_p2 = pneg %p3982_p1 }
  0x1b   : > { %p3990_p8 = pnand %p3989_p7, %p3983_p2 }
  0x1d   : > { %3993 = shalt.err (!%p3990_p8)
}
  0x1e   : > { %s4119_s14 = smov 256   ;;  %s4120_s16 = smov 16  }
  0x1f   : > { %3570 = dma.hbm_to_vmem [thread:$0]  (!%p4235_p12), %s4833_s5, 8192, %s284_s23, [#allocation6], %s4119_s14, %s4119_s14, %s4120_s16  }
  0x20   : > { %s4005_s25 = scalar_lea.vmem %s271_s26, 8192  ;;  %p4013_p9 = scmp.lt.s32.totalorder %s271_s26, %s271_s26 }
  0x21   : > { %p4006_p11 = scmp.ne.s32.totalorder %s271_s26, %s4005_s25  ;;  %p4014_p6 = scmp.lt.s32.totalorder %s4005_s25, %s4005_s25 }
  0x23   : > { %p4008_p0 = pnand %p4006_p11, %p3970_p13  ;;  %p4015_p3 = por %p4014_p6, %p4013_p9 }
  0x25   : > { %p4009_p1 = pneg %p4008_p0 }
  0x27   : > { %p4016_p2 = pnand %p4015_p3, %p4009_p1 }
  0x29   : > { %4019 = shalt.err (!%p4016_p2)
}
  0x2a   : > { %3567 = dma.hbm_to_vmem [thread:$0]  (!%p4235_p12), %s4832_s4, 8192, %s271_s26, [#allocation3], %s4119_s14, %s4119_s14, %s4120_s16  }
  0x2b   : > { %s4031_s23 = scalar_lea.vmem %s300_s28, 8192  ;;  %p4039_p11 = scmp.lt.s32.totalorder %s300_s28, %s300_s28 }
  0x2c   : > { %p4032_p4 = scmp.ne.s32.totalorder %s300_s28, %s4031_s23  ;;  %p4040_p0 = scmp.lt.s32.totalorder %s4031_s23, %s4031_s23 }
  0x2e   : > { %p4034_p7 = pnand %p4032_p4, %p3970_p13  ;;  %p4041_p5 = por %p4040_p0, %p4039_p11 }
  0x30   : > { %p4035_p8 = pneg %p4034_p7 }
  0x32   : > { %p4042_p6 = pnand %p4041_p5, %p4035_p8 }
  0x34   : > { %4045 = shalt.err (!%p4042_p6)
}
  0x35   : > { %s4121_s17 = smov 128   ;;  %s4122_s22 = smov 8  }
  0x36   : > { %3573 = dma.hbm_to_vmem [thread:$0]  (!%p4235_p12), %s4835_s7, 8192, %s300_s28, [#allocation6], %s4121_s17, %s4121_s17, %s4122_s22  }
  0x37   : > { %328 = sbr.rel (%p4227_p10) target bundleno = 1148 (0x47c), region = 56 }
  0x3c   : > { %p4852_p9 = scmp.eq.s32.totalorder %s4199_s13, 0 }
  0x3e   : > { %4089 = dma.done.wait (%p4852_p9), [#allocation3], 8192   ;;  %p4853_p13 = pmov %p4852_p9 }
  0x3f   : > { %p4854_p5 = pmov %p4852_p9 }
  0x40   : > { %4091 = vsyncadd (%p4853_p13), [#allocation3], 4294959104 }
  0x41   : > { %4093 = dma.done.wait (%p4854_p5), [#allocation6], 16384   ;;  %p4855_p1 = pmov %p4854_p5 }
  0x42   : > { %s3299_s24 = sshll.u32 %s4199_s13, 2  ;;  %v4123_v0 = vmov 2   ;;  %v4124_v1 = vmov 1   ;;  %v4125_v2 = vmov 0   ;;  %v3656_v6 = vld [vmem:[%s4831_s3 + $0x74] ss:$8 sps:$4 sm:$0xff]   ;;  %v478_v35 = vlaneseq }
  0x43   : > { %4095 = vsyncadd (%p4855_p1), [#allocation6], 4294950912  ;;  %3629 = vset.pattern.permute.xlu0 %v4123_v0  ;;  %3628 = vset.pattern.permute.xlu1 %v4124_v1  ;;  %p374_p10 = scmp.lt.s32.totalorder %s3299_s24, 7  ;;  %v3658_v7 = vld [vmem:[%s4831_s3 + $0x70] ss:$8 sps:$4 sm:$0xff]   ;;  %vm1136_vm0 = vcmask 1041409  }
  0x44   : > { %873 = vmatprep.mubr.bf16.mxu0 %v4125_v2  ;;  %841 = vmatprep.subr.bf16.mxu0 %v3656_v6  ;;  %v3659_v9 = vld [vmem:[%s4831_s3 + $0x64] ss:$8 sps:$4 sm:$0xff]   ;;  %v3661_v10 = vld [vmem:[%s4831_s3 + $0x60] ss:$8 sps:$4 sm:$0xff]   ;;  %v3662_v11 = vld [vmem:[%s4831_s3 + $0x54] ss:$8 sps:$4 sm:$0xff]  }
  0x45   : > { %s4879_s24 = smov (!%p374_p10, %s3299_s24), 7  ;;  %842 = vmatpush1.bf16.msra.mxu0 %v3658_v7  ;;  %v3664_v12 = vld [vmem:[%s4831_s3 + $0x50] ss:$8 sps:$4 sm:$0xff]   ;;  %v3665_v13 = vld [vmem:[%s4831_s3 + $0x44] ss:$8 sps:$4 sm:$0xff]   ;;  %v4371_v38 = vshrl.u32 %v478_v35, 7 }
  0x46   : > { %s3516_s21 = sshll.u32 %s4879_s24, 5  ;;  %843 = vmatprep.subr.bf16.mxu0 %v3659_v9  ;;  %v3667_v14 = vld [vmem:[%s4831_s3 + $0x40] ss:$8 sps:$4 sm:$0xff]   ;;  %v3668_v16 = vld [vmem:[%s4831_s3 + $0x34] ss:$8 sps:$4 sm:$0xff]   ;;  %vm1138_vm1 = vcmask 1042434  }
  0x47   : > { %s4282_s14 = scalar_lea.vmem %s4828_s0, %s3516_s21  ;;  %v3670_v17 = vld [vmem:[%s4831_s3 + $0x30] ss:$8 sps:$4 sm:$0xff]   ;;  %v3671_v19 = vld [vmem:[%s4831_s3 + $0x24] ss:$8 sps:$4 sm:$0xff]   ;;  %v3673_v20 = vld [vmem:[%s4831_s3 + $0x20] ss:$8 sps:$4 sm:$0xff]  }
  0x48   : > { %v381_v3 = vld [vmem:[%s4282_s14] sm:$0xff]  ;;  %v383_v4 = vld [vmem:[%s4282_s14 + $0x10] sm:$0xff]  ;;  %v382_v5 = vld [vmem:[%s4282_s14 + $0x8] sm:$0xff]  ;;  %v4375_v41 = vsub.s32 1, %v4371_v38  ;;  %v4378_v42 = vsub.s32 0, %v4371_v38  ;;  %v4384_v44 = vsub.s32 2, %v4371_v38 }
  0x49   : > { %599 = vperm.xlu0 %3629, %v381_v3   ;;  %499 = vperm.xlu1 %3628, %v381_v3   ;;  %v385_v8 = vld [vmem:[%s4282_s14 + $0x20] sm:$0xff]  ;;  %v384_v15 = vld [vmem:[%s4282_s14 + $0x18] sm:$0xff]  ;;  %v386_v18 = vld [vmem:[%s4282_s14 + $0x28] sm:$0xff]  ;;  %vm1140_vm2 = vcmask 1043459   ;;  %s370_s27 = sand.u32 1, %s4106_s10   ;;  %vm3171_vm3 = vcmask 1045509  }
  0x4a   : > { %844 = vmatpush1.bf16.msra.mxu0 %v3661_v10  ;;  %v3674_v21 = vld [vmem:[%s4831_s3 + $0x14] ss:$8 sps:$4 sm:$0xff]   ;;  %v3676_v23 = vld [vmem:[%s4831_s3 + $0x10] ss:$8 sps:$4 sm:$0xff]   ;;  %v3677_v24 = vld [vmem:[%s4831_s3 + $0x4] ss:$8 sps:$4 sm:$0xff]  }
  0x4b   : > { %845 = vmatprep.subr.bf16.mxu0 %v3662_v11  ;;  %v388_v22 = vld [vmem:[%s4282_s14 + $0x38] sm:$0xff]  ;;  %v390_v25 = vld [vmem:[%s4282_s14 + $0x48] sm:$0xff]  ;;  %v387_v28 = vld [vmem:[%s4282_s14 + $0x30] sm:$0xff]  ;;  %s3298_s24 = sshll.u32 %s370_s27, 3  ;;  %vm3175_vm4 = vcmask 1046534   ;;  %s3517_s21 = sshll.u32 %s4199_s13, 7 }
  0x4c   : > { %v3679_v26 = vld [vmem:[%s4831_s3] ss:$8 sps:$4 sm:$0xff]   ;;  %v392_v27 = vld [vmem:[%s4282_s14 + $0x58] sm:$0xff]  ;;  %v391_v30 = vld [vmem:[%s4282_s14 + $0x50] sm:$0xff]  ;;  %s372_s26 = scalar_lea.vmem [#allocation8], %s3298_s24  ;;  %vm3179_vm5 = vcmask 1047559   ;;  %s4793_s29 = scalar_lea.hbm %s4837_s9, %s3517_s21 }
  0x4d   : > { %607 = vperm.xlu0 %3629, %v383_v4   ;;  %503 = vperm.xlu1 %3628, %v382_v5   ;;  %v389_v29 = vld [vmem:[%s4282_s14 + $0x40] sm:$0xff]  ;;  %v394_v32 = vld [vmem:[%s4282_s14 + $0x68] sm:$0xff]  ;;  %v396_v33 = vld [vmem:[%s4282_s14 + $0x78] sm:$0xff]  ;;  %s3184_s23 = scalar_lea.sflag [#allocation4], %s370_s27  ;;  %p4872_p3 = scmp.ne.s32.totalorder %s4848_s19, 0 }
  0x4e   : > { %846 = vmatpush1.bf16.msra.mxu0 %v3664_v12  ;;  %v393_v31 = vld [vmem:[%s4282_s14 + $0x60] sm:$0xff]  ;;  %v395_v34 = vld [vmem:[%s4282_s14 + $0x70] sm:$0xff]  ;;  %s3198_s14 = sshll.u32 %s372_s26, 4  ;;  %s4127_s13 = smov [#allocation8]   ;;  %s3199_s14 = int_to_ptr.vmem [resolvable:$true] %s3198_s14 }
  0x4f   : > { %847 = vmatprep.subr.bf16.mxu0 %v3665_v13  ;;  %v397_v43 = vld [vmem:[%s4829_s1] sm:$0x7]  ;;  %s4046_s17 = scalar_lea.vmem %s3199_s14, 128  ;;  %s4050_s22 = sshll.u32 %s4127_s13, 4  ;;  %s4051_s22 = int_to_ptr.vmem [resolvable:$false] %s4050_s22 }
  0x50   : > { %v4388_v47 = vrot.slane %v397_v43, %v4375_v41  ;;  %v4391_v48 = vrot.slane %v397_v43, %v4378_v42  ;;  %v4394_v49 = vrot.slane %v397_v43, %v4384_v44  ;;  %v4405_v61 = vld [vmem:[%s4830_s2] ss:$0 sm:$0xff]  ;;  %p4047_p12 = scmp.ne.s32.totalorder %s3199_s14, %s4046_s17  ;;  %s4052_s25 = scalar_lea.vmem %s4051_s22, 256 }
  0x51   : > { %615 = vperm.xlu0 %3629, %v385_v8   ;;  %3630 = vset.pattern.permute.xlu1 %v4123_v0  ;;  %p4053_p7 = scmp.lt.s32.totalorder %s3199_s14, %s4051_s22  ;;  %p4054_p8 = scmp.lt.s32.totalorder %s4052_s25, %s4046_s17 }
  0x52   : > { %603 = vperm.xlu1 %3630, %v382_v5   ;;  %848 = vmatpush1.bf16.msra.mxu0 %v3667_v14  ;;  %p4048_p2 = pnand %p4047_p12, %p4872_p3 }
  0x53   : > { %849 = vmatprep.subr.bf16.mxu0 %v3668_v16  ;;  %p4055_p11 = por %p4054_p8, %p4053_p7 }
  0x54   : > { %p4049_p4 = pneg %p4048_p2 }
  0x55   : > { %3636 = vset.pattern.permute.xlu0 %v4125_v2 }
  0x56   : > { %400 = vperm.xlu0 %3636, %v381_v3   ;;  %3631 = vset.pattern.permute.xlu1 %v4125_v2  ;;  %p4056_p0 = pnand %p4055_p11, %p4049_p4 }
  0x57   : > { %410 = vperm.xlu1 %3631, %v383_v4   ;;  %850 = vmatpush1.bf16.msra.mxu0 %v3670_v17 }
  0x58   : > { %851 = vmatprep.subr.bf16.mxu0 %v3671_v19 }
  0x5a   : > { %405 = vperm.xlu0 %3636, %v382_v5  }
  0x5b   : > { %3632 = vset.pattern.permute.xlu1 %v4124_v1  ;;  %852 = vmatpush1.bf16.msra.mxu0 %v3673_v20 }
  0x5c   : > { %507 = vperm.xlu1 %3632, %v383_v4   ;;  %853 = vmatprep.subr.bf16.mxu0 %v3674_v21 }
  0x5e   : > { %415 = vperm.xlu0 %3636, %v384_v15  }
  0x5f   : > { %854 = vmatpush1.bf16.msra.mxu0 %v3676_v23 }
  0x60   : > { %511 = vperm.xlu1 %3632, %v384_v15   ;;  %855 = vmatprep.subr.bf16.mxu0 %v3677_v24 }
  0x62   : > { %425 = vperm.xlu0 %3636, %v386_v18  }
  0x63   : > { %856 = vmatpush1.bf16.msra.mxu0 %v3679_v26 }
  0x64   : > { %3633 = vset.pattern.permute.xlu1 %v4123_v0 }
  0x65   : > { %611 = vperm.xlu1 %3633, %v384_v15  }
  0x66   : > { %435 = vperm.xlu0 %3636, %v388_v22  }
  0x69   : > { %3634 = vset.pattern.permute.xlu1 %v4125_v2 }
  0x6a   : > { %420 = vperm.xlu1 %3634, %v385_v8   ;;  %445 = vperm.xlu0 %3636, %v390_v25  }
  0x6e   : > { %3635 = vset.pattern.permute.xlu1 %v4124_v1  ;;  %455 = vperm.xlu0 %3636, %v392_v27  }
  0x6f   : > { %515 = vperm.xlu1 %3635, %v385_v8  }
  0x72   : > { %3645 = vset.pattern.permute.xlu0 %v4123_v0 }
  0x73   : > { %519 = vperm.xlu1 %3635, %v386_v18   ;;  %623 = vperm.xlu0 %3645, %v387_v28  }
  0x77   : > { %3637 = vset.pattern.permute.xlu1 %v4123_v0  ;;  %631 = vperm.xlu0 %3645, %v389_v29  }
  0x78   : > { %619 = vperm.xlu1 %3637, %v386_v18  }
  0x7b   : > { %639 = vperm.xlu0 %3645, %v391_v30  }
  0x7c   : > { %3638 = vset.pattern.permute.xlu1 %v4125_v2 }
  0x7d   : > { %430 = vperm.xlu1 %3638, %v387_v28  }
  0x7f   : > { %647 = vperm.xlu0 %3645, %v393_v31  }
  0x81   : > { %3639 = vset.pattern.permute.xlu1 %v4124_v1 }
  0x82   : > { %523 = vperm.xlu1 %3639, %v387_v28  }
  0x83   : > { %3650 = vset.pattern.permute.xlu0 %v4125_v2 }
  0x84   : > { %465 = vperm.xlu0 %3650, %v394_v32  }
  0x86   : > { %527 = vperm.xlu1 %3639, %v388_v22  }
  0x88   : > { %475 = vperm.xlu0 %3650, %v396_v33  }
  0x8a   : > { %3640 = vset.pattern.permute.xlu1 %v4123_v0 }
  0x8b   : > { %627 = vperm.xlu1 %3640, %v388_v22  }
  0x8c   : > { %3654 = vset.pattern.permute.xlu0 %v4123_v0 }
  0x8d   : > { %655 = vperm.xlu0 %3654, %v395_v34  }
  0x8f   : > { %3641 = vset.pattern.permute.xlu1 %v4125_v2 }
  0x90   : > { %440 = vperm.xlu1 %3641, %v389_v29  }
  0x94   : > { %3642 = vset.pattern.permute.xlu1 %v4124_v1 }
  0x95   : > { %531 = vperm.xlu1 %3642, %v389_v29  }
  0x99   : > { %535 = vperm.xlu1 %3642, %v390_v25  }
  0x9d   : > { %3643 = vset.pattern.permute.xlu1 %v4123_v0 }
  0x9e   : > { %635 = vperm.xlu1 %3643, %v390_v25  }
  0xa2   : > { %3644 = vset.pattern.permute.xlu1 %v4125_v2 }
  0xa3   : > { %450 = vperm.xlu1 %3644, %v391_v30  }
  0xa7   : > { %3646 = vset.pattern.permute.xlu1 %v4124_v1 }
  0xa8   : > { %539 = vperm.xlu1 %3646, %v391_v30  }
  0xac   : > { %543 = vperm.xlu1 %3646, %v392_v27  }
  0xb0   : > { %3647 = vset.pattern.permute.xlu1 %v4123_v0 }
  0xb1   : > { %643 = vperm.xlu1 %3647, %v392_v27  }
  0xb5   : > { %3648 = vset.pattern.permute.xlu1 %v4125_v2 }
  0xb6   : > { %460 = vperm.xlu1 %3648, %v393_v31  }
  0xba   : > { %3649 = vset.pattern.permute.xlu1 %v4124_v1 }
  0xbb   : > { %547 = vperm.xlu1 %3649, %v393_v31  }
  0xbf   : > { %551 = vperm.xlu1 %3649, %v394_v32  }
  0xc3   : > { %3651 = vset.pattern.permute.xlu1 %v4123_v0 }
  0xc4   : > { %651 = vperm.xlu1 %3651, %v394_v32   ;;  %v500_v36 = vpop.permute.xlu1 %499  ;;  %v600_v37 = vpop.permute.xlu0 %599 }
  0xc5   : > { %v566_v51 = vmul.f32 %v4388_v47, %v500_v36  ;;  %v666_v52 = vmul.f32 %v4394_v49, %v600_v37 }
  0xc8   : > { %3652 = vset.pattern.permute.xlu1 %v4125_v2  ;;  %v504_v39 = vpop.permute.xlu1 %503  ;;  %v608_v40 = vpop.permute.xlu0 %607 }
  0xc9   : > { %470 = vperm.xlu1 %3652, %v395_v34   ;;  %v567_v57 = vmul.f32 %v4388_v47, %v504_v39 }
  0xcc   : > { %v616_v45 = vpop.permute.xlu0 %615 }
  0xcd   : > { %3653 = vset.pattern.permute.xlu1 %v4124_v1  ;;  %v604_v46 = vpop.permute.xlu1 %603  ;;  %v670_v31 = vmul.f32 %v4394_v49, %v616_v45 }
  0xce   : > { %555 = vperm.xlu1 %3653, %v395_v34   ;;  %v667_v62 = vmul.f32 %v4394_v49, %v604_v46 }
  0xd1   : > { %v401_v50 = vpop.permute.xlu0 %400 }
  0xd2   : > { %v482_v53 = vmul.f32 %v4391_v48, %v401_v50  ;;  %559 = vperm.xlu1 %3653, %v396_v33   ;;  %v411_v54 = vpop.permute.xlu1 %410 }
  0xd3   : > { %v484_v3 = vmul.f32 %v4391_v48, %v411_v54 }
  0xd4   : > { %v582_v55 = vadd.f32 %v566_v51, %v482_v53 }
  0xd5   : > { %v406_v56 = vpop.permute.xlu0 %405 }
  0xd6   : > { %v682_v58 = vadd.f32 %v666_v52, %v582_v55  ;;  %v483_v59 = vmul.f32 %v4391_v48, %v406_v56  ;;  %3655 = vset.pattern.permute.xlu1 %v4123_v0  ;;  %v668_v0 = vmul.f32 %v4394_v49, %v608_v40 }
  0xd7   : > { %659 = vperm.xlu1 %3655, %v396_v33   ;;  %v508_v60 = vpop.permute.xlu1 %507 }
  0xd8   : > { %v583_v63 = vadd.f32 %v567_v57, %v483_v59  ;;  %v568_v1 = vmul.f32 %v4388_v47, %v508_v60  ;;  %v705_v6 = vadd.f32 %v4405_v61, %v682_v58 }
  0xd9   : > { %v416_v5 = vpop.permute.xlu0 %415 }
  0xda   : > { %v683_v4 = vadd.f32 %v667_v62, %v583_v63  ;;  %v584_v7 = vadd.f32 %v568_v1, %v484_v3  ;;  %v485_v10 = vmul.f32 %v4391_v48, %v416_v5  ;;  %v721_v12 = vmax.f32 %v705_v6, 0.0 }
  0xdb   : > { %v512_v8 = vpop.permute.xlu1 %511 }
  0xdc   : > { %v706_v9 = vadd.f32 %v4405_v61, %v683_v4  ;;  %v569_v11 = vmul.f32 %v4388_v47, %v512_v8  ;;  %v684_v14 = vadd.f32 %v668_v0, %v584_v7 }
  0xdd   : > { %v426_v23 = vpop.permute.xlu0 %425 }
  0xde   : > { %v722_v13 = vmax.f32 %v706_v9, 0.0  ;;  %v585_v17 = vadd.f32 %v569_v11, %v485_v10  ;;  %v707_v20 = vadd.f32 %v4405_v61, %v684_v14  ;;  %v487_v34 = vmul.f32 %v4391_v48, %v426_v23 }
  0xe0   : > { %v612_v15 = vpop.permute.xlu1 %611  ;;  %v737_v16 = vpack.c.bf16 %v722_v13, %v721_v12  ;;  %v723_v25 = vmax.f32 %v707_v20, 0.0 }
  0xe1   : > { %v669_v18 = vmul.f32 %v4394_v49, %v612_v15  ;;  %v436_v30 = vpop.permute.xlu0 %435 }
  0xe2   : > { %874 = vmatmul.mubr.bf16.vlgmr.msra.gmra.mxu0 %v737_v16  ;;  %v489_v1 = vmul.f32 %v4391_v48, %v436_v30 }
  0xe3   : > { %v685_v19 = vadd.f32 %v669_v18, %v585_v17  ;;  %883 = vmatprep.mubr.bf16.mxu0 %v4125_v2 }
  0xe5   : > { %v708_v21 = vadd.f32 %v4405_v61, %v685_v19  ;;  %v421_v22 = vpop.permute.xlu1 %420  ;;  %v446_v37 = vpop.permute.xlu0 %445 }
  0xe6   : > { %v486_v29 = vmul.f32 %v4391_v48, %v421_v22 }
  0xe7   : > { %v724_v24 = vmax.f32 %v708_v21, 0.0  ;;  %v491_v21 = vmul.f32 %v4391_v48, %v446_v37 }
  0xe9   : > { %v738_v26 = vpack.c.bf16 %v724_v24, %v723_v25  ;;  %v456_v53 = vpop.permute.xlu0 %455 }
  0xea   : > { %v516_v27 = vpop.permute.xlu1 %515 }
  0xeb   : > { %v570_v28 = vmul.f32 %v4388_v47, %v516_v27  ;;  %884 = vmatmul.mubr.bf16.gmra.mxu0 %v738_v26 }
  0xec   : > { %893 = vmatprep.mubr.bf16.mxu0 %v4125_v2 }
  0xed   : > { %v586_v32 = vadd.f32 %v570_v28, %v486_v29 }
  0xee   : > { %v520_v33 = vpop.permute.xlu1 %519  ;;  %v624_v58 = vpop.permute.xlu0 %623 }
  0xef   : > { %v571_v35 = vmul.f32 %v4388_v47, %v520_v33  ;;  %v686_v36 = vadd.f32 %v670_v31, %v586_v32  ;;  %v672_v62 = vmul.f32 %v4394_v49, %v624_v58 }
  0xf1   : > { %v587_v40 = vadd.f32 %v571_v35, %v487_v34  ;;  %v709_v50 = vadd.f32 %v4405_v61, %v686_v36 }
  0xf2   : > { %v632_v16 = vpop.permute.xlu0 %631 }
  0xf3   : > { %v620_v39 = vpop.permute.xlu1 %619  ;;  %v725_v54 = vmax.f32 %v709_v50, 0.0  ;;  %v674_v19 = vmul.f32 %v4394_v49, %v632_v16  ;;  %v493_v50 = vmul.f32 %v4391_v48, %v456_v53 }
  0xf4   : > { %v671_v43 = vmul.f32 %v4394_v49, %v620_v39 }
  0xf6   : > { %v687_v46 = vadd.f32 %v671_v43, %v587_v40  ;;  %v640_v36 = vpop.permute.xlu0 %639 }
  0xf7   : > { %v676_v40 = vmul.f32 %v4394_v49, %v640_v36 }
  0xf8   : > { %v710_v51 = vadd.f32 %v4405_v61, %v687_v46  ;;  %v431_v52 = vpop.permute.xlu1 %430 }
  0xf9   : > { %v488_v59 = vmul.f32 %v4391_v48, %v431_v52 }
  0xfa   : > { %v726_v45 = vmax.f32 %v710_v51, 0.0 }
  0xfc   : > { %v739_v55 = vpack.c.bf16 %v726_v45, %v725_v54 }
  0xfd   : > { %v524_v56 = vpop.permute.xlu1 %523 }
  0xfe   : > { %v572_v57 = vmul.f32 %v4388_v47, %v524_v56  ;;  %894 = vmatmul.mubr.bf16.gmra.mxu0 %v739_v55 }
  0xff   : > { %903 = vmatprep.mubr.bf16.mxu0 %v4125_v2 }
 0x100   : > { %v588_v60 = vadd.f32 %v572_v57, %v488_v59 }
 0x101   : > { %v528_v63 = vpop.permute.xlu1 %527 }
 0x102   : > { %v573_v3 = vmul.f32 %v4388_v47, %v528_v63  ;;  %v688_v4 = vadd.f32 %v672_v62, %v588_v60  ;;  %v648_v62 = vpop.permute.xlu0 %647 }
 0x104   : > { %v589_v6 = vadd.f32 %v573_v3, %v489_v1  ;;  %v711_v7 = vadd.f32 %v4405_v61, %v688_v4 }
 0x106   : > { %v628_v5 = vpop.permute.xlu1 %627  ;;  %v727_v11 = vmax.f32 %v711_v7, 0.0  ;;  %v466_v4 = vpop.permute.xlu0 %465 }
 0x107   : > { %v673_v0 = vmul.f32 %v4394_v49, %v628_v5  ;;  %v495_v7 = vmul.f32 %v4391_v48, %v466_v4  ;;  %v3715_v4 = vld [vmem:[#allocation2 + $0x40] ss:$16 sps:$4 sm:$0xff]  }
 0x109   : > { %v689_v8 = vadd.f32 %v673_v0, %v589_v6  ;;  %v678_v0 = vmul.f32 %v4394_v49, %v648_v62  ;;  %v3706_v62 = vld [vmem:[#allocation2 + $0x68] ss:$16 sps:$4 sm:$0xff]  }
 0x10b   : > { %v712_v9 = vadd.f32 %v4405_v61, %v689_v8  ;;  %v441_v10 = vpop.permute.xlu1 %440 }
 0x10c   : > { %v490_v17 = vmul.f32 %v4391_v48, %v441_v10 }
 0x10d   : > { %v728_v12 = vmax.f32 %v712_v9, 0.0 }
 0x10f   : > { %v740_v13 = vpack.c.bf16 %v728_v12, %v727_v11 }
 0x110   : > { %v532_v14 = vpop.permute.xlu1 %531 }
 0x111   : > { %v574_v15 = vmul.f32 %v4388_v47, %v532_v14  ;;  %904 = vmatmul.mubr.bf16.gmra.mxu0 %v740_v13 }
 0x112   : > { %913 = vmatprep.mubr.bf16.mxu0 %v4125_v2 }
 0x113   : > { %v590_v18 = vadd.f32 %v574_v15, %v490_v17  ;;  %v476_v17 = vpop.permute.xlu0 %475 }
 0x114   : > { %v536_v20 = vpop.permute.xlu1 %535 }
 0x115   : > { %v575_v22 = vmul.f32 %v4388_v47, %v536_v20  ;;  %v690_v23 = vadd.f32 %v674_v19, %v590_v18 }
 0x117   : > { %v591_v25 = vadd.f32 %v575_v22, %v491_v21  ;;  %v713_v27 = vadd.f32 %v4405_v61, %v690_v23  ;;  %v656_v23 = vpop.permute.xlu0 %655 }
 0x119   : > { %v636_v24 = vpop.permute.xlu1 %635  ;;  %v729_v31 = vmax.f32 %v713_v27, 0.0 }
 0x11a   : > { %v675_v26 = vmul.f32 %v4394_v49, %v636_v24 }
 0x11c   : > { %v691_v28 = vadd.f32 %v675_v26, %v591_v25  ;;  %v680_v26 = vmul.f32 %v4394_v49, %v656_v23  ;;  %v3745_v23 = vld [vmem:[#allocation2 + $0x1a0] ss:$16 sps:$4 sm:$0xff]  }
 0x11e   : > { %v714_v29 = vadd.f32 %v4405_v61, %v691_v28  ;;  %v451_v30 = vpop.permute.xlu1 %450 }
 0x11f   : > { %v492_v37 = vmul.f32 %v4391_v48, %v451_v30 }
 0x120   : > { %v730_v32 = vmax.f32 %v714_v29, 0.0  ;;  %v497_v29 = vmul.f32 %v4391_v48, %v476_v17  ;;  %v3738_v17 = vld [vmem:[#allocation2 + $0x1cc] ss:$16 sps:$4 sm:$0xff]  }
 0x122   : > { %v741_v33 = vpack.c.bf16 %v730_v32, %v729_v31 }
 0x123   : > { %v540_v34 = vpop.permute.xlu1 %539 }
 0x124   : > { %v576_v35 = vmul.f32 %v4388_v47, %v540_v34  ;;  %914 = vmatmul.mubr.bf16.gmra.mxu0 %v741_v33 }
 0x125   : > { %923 = vmatprep.mubr.bf16.mxu0 %v4125_v2 }
 0x126   : > { %v592_v39 = vadd.f32 %v576_v35, %v492_v37 }
 0x127   : > { %v544_v43 = vpop.permute.xlu1 %543 }
 0x128   : > { %v577_v46 = vmul.f32 %v4388_v47, %v544_v43  ;;  %v692_v51 = vadd.f32 %v676_v40, %v592_v39  ;;  %v3680_v40 = vld [vmem:[#allocation2 + $0xe4] ss:$16 sps:$4 sm:$0xff]   ;;  %v3684_v43 = vld [vmem:[#allocation2 + $0xec] ss:$16 sps:$4 sm:$0xff]  }
 0x129   : > { %1469 = vmatprep.subr.bf16.mxu1 %v3680_v40  ;;  %1510 = vmatprep.subr.bf16.mxu0 %v3684_v43  ;;  %v3762_v40 = vld [vmem:[#allocation2 + $0x14c] ss:$16 sps:$4 sm:$0xff]   ;;  %v3760_v43 = vld [vmem:[#allocation2 + $0x148] ss:$16 sps:$4 sm:$0xff]  }
 0x12a   : > { %v593_v45 = vadd.f32 %v577_v46, %v493_v50  ;;  %v715_v55 = vadd.f32 %v4405_v61, %v692_v51  ;;  %v3682_v46 = vld [vmem:[#allocation2 + $0xe8] ss:$16 sps:$4 sm:$0xff]   ;;  %v3690_v50 = vld [vmem:[#allocation2 + $0xcc] ss:$16 sps:$4 sm:$0xff]   ;;  %v3691_v51 = vld [vmem:[#allocation2 + $0xc0] ss:$16 sps:$4 sm:$0xff]  }
 0x12b   : > { %1511 = vmatpush1.bf16.msra.mxu0 %v3682_v46  ;;  %v3763_v46 = vld [vmem:[#allocation2 + $0x140] ss:$16 sps:$4 sm:$0xff]  }
 0x12c   : > { %v644_v52 = vpop.permute.xlu1 %643  ;;  %v731_v59 = vmax.f32 %v715_v55, 0.0  ;;  %1512 = vmatprep.subr.bf16.mxu0 %v3690_v50  ;;  %v3698_v55 = vld [vmem:[#allocation2 + $0x84] ss:$16 sps:$4 sm:$0xff]  }
 0x12d   : > { %v677_v54 = vmul.f32 %v4394_v49, %v644_v52  ;;  %v3696_v52 = vld [vmem:[#allocation2 + $0xac] ss:$16 sps:$4 sm:$0xff]   ;;  %v3764_v50 = vld [vmem:[#allocation2 + $0x124] ss:$16 sps:$4 sm:$0xff]  }
 0x12f   : > { %v693_v56 = vadd.f32 %v677_v54, %v593_v45  ;;  %v3694_v45 = vld [vmem:[#allocation2 + $0xa8] ss:$16 sps:$4 sm:$0xff]   ;;  %v3697_v54 = vld [vmem:[#allocation2 + $0xa0] ss:$16 sps:$4 sm:$0xff]  }
 0x131   : > { %v716_v57 = vadd.f32 %v4405_v61, %v693_v56  ;;  %v461_v58 = vpop.permute.xlu1 %460  ;;  %v3702_v56 = vld [vmem:[#allocation2 + $0x8c] ss:$16 sps:$4 sm:$0xff]  }
 0x132   : > { %v494_v53 = vmul.f32 %v4391_v48, %v461_v58  ;;  %v3703_v58 = vld [vmem:[#allocation2 + $0x80] ss:$16 sps:$4 sm:$0xff]  }
 0x133   : > { %v732_v60 = vmax.f32 %v716_v57, 0.0  ;;  %v3700_v57 = vld [vmem:[#allocation2 + $0x88] ss:$16 sps:$4 sm:$0xff]  }
 0x135   : > { %v742_v63 = vpack.c.bf16 %v732_v60, %v731_v59  ;;  %v3704_v59 = vld [vmem:[#allocation2 + $0x64] ss:$16 sps:$4 sm:$0xff]   ;;  %v3708_v60 = vld [vmem:[#allocation2 + $0x6c] ss:$16 sps:$4 sm:$0xff]  }
 0x136   : > { %v548_v1 = vpop.permute.xlu1 %547 }
 0x137   : > { %v578_v3 = vmul.f32 %v4388_v47, %v548_v1  ;;  %924 = vmatmul.mubr.bf16.gmra.mxu0 %v742_v63  ;;  %v3709_v63 = vld [vmem:[#allocation2 + $0x60] ss:$16 sps:$4 sm:$0xff]   ;;  %v3710_v1 = vld [vmem:[#allocation2 + $0x44] ss:$16 sps:$4 sm:$0xff]  }
 0x138   : > { %933 = vmatprep.mubr.bf16.mxu0 %v4125_v2 }
 0x139   : > { %v594_v5 = vadd.f32 %v578_v3, %v494_v53  ;;  %v3714_v3 = vld [vmem:[#allocation2 + $0x4c] ss:$16 sps:$4 sm:$0xff]   ;;  %v3712_v53 = vld [vmem:[#allocation2 + $0x48] ss:$16 sps:$4 sm:$0xff]  }
 0x13a   : > { %v552_v6 = vpop.permute.xlu1 %551 }
 0x13b   : > { %v579_v8 = vmul.f32 %v4388_v47, %v552_v6  ;;  %v694_v9 = vadd.f32 %v678_v0, %v594_v5  ;;  %v3716_v5 = vld [vmem:[#allocation2 + $0x24] ss:$16 sps:$4 sm:$0xff]   ;;  %v3720_v6 = vld [vmem:[#allocation2 + $0x2c] ss:$16 sps:$4 sm:$0xff]   ;;  %v3718_v0 = vld [vmem:[#allocation2 + $0x28] ss:$16 sps:$4 sm:$0xff]  }
 0x13d   : > { %v595_v11 = vadd.f32 %v579_v8, %v495_v7  ;;  %v717_v14 = vadd.f32 %v4405_v61, %v694_v9  ;;  %v3721_v7 = vld [vmem:[#allocation2 + $0x20] ss:$16 sps:$4 sm:$0xff]   ;;  %v3722_v8 = vld [vmem:[#allocation2 + $0x4] ss:$16 sps:$4 sm:$0xff]   ;;  %v3726_v9 = vld [vmem:[#allocation2 + $0xc] ss:$16 sps:$4 sm:$0xff]  }
 0x13f   : > { %v652_v10 = vpop.permute.xlu1 %651  ;;  %v733_v19 = vmax.f32 %v717_v14, 0.0  ;;  %v3730_v14 = vld [vmem:[#allocation2 + $0x1e8] ss:$16 sps:$4 sm:$0xff]  }
 0x140   : > { %v679_v12 = vmul.f32 %v4394_v49, %v652_v10  ;;  %v3724_v10 = vld [vmem:[#allocation2 + $0x8] ss:$16 sps:$4 sm:$0xff]  }
 0x142   : > { %v695_v13 = vadd.f32 %v679_v12, %v595_v11  ;;  %v3727_v11 = vld [vmem:[#allocation2] ss:$16 sps:$4 sm:$0xff]   ;;  %v3728_v12 = vld [vmem:[#allocation2 + $0x1e4] ss:$16 sps:$4 sm:$0xff]  }
 0x144   : > { %v718_v15 = vadd.f32 %v4405_v61, %v695_v13  ;;  %v471_v16 = vpop.permute.xlu1 %470  ;;  %v3732_v13 = vld [vmem:[#allocation2 + $0x1ec] ss:$16 sps:$4 sm:$0xff]  }
 0x145   : > { %v496_v24 = vmul.f32 %v4391_v48, %v471_v16  ;;  %v3686_v48 = vld [vmem:[#allocation2 + $0xc4] ss:$16 sps:$4 sm:$0xff]  }
 0x146   : > { %v734_v18 = vmax.f32 %v718_v15, 0.0  ;;  %v3733_v15 = vld [vmem:[#allocation2 + $0x1e0] ss:$16 sps:$4 sm:$0xff]   ;;  %v3734_v16 = vld [vmem:[#allocation2 + $0x1c4] ss:$16 sps:$4 sm:$0xff]  }
 0x148   : > { %v743_v20 = vpack.c.bf16 %v734_v18, %v733_v19  ;;  %v3736_v18 = vld [vmem:[#allocation2 + $0x1c8] ss:$16 sps:$4 sm:$0xff]   ;;  %v3739_v19 = vld [vmem:[#allocation2 + $0x1c0] ss:$16 sps:$4 sm:$0xff]  }
 0x149   : > { %v556_v21 = vpop.permute.xlu1 %555 }
 0x14a   : > { %v580_v22 = vmul.f32 %v4388_v47, %v556_v21  ;;  %934 = vmatmul.mubr.bf16.gmra.mxu0 %v743_v20  ;;  %v3740_v20 = vld [vmem:[#allocation2 + $0x1a4] ss:$16 sps:$4 sm:$0xff]   ;;  %v3744_v21 = vld [vmem:[#allocation2 + $0x1ac] ss:$16 sps:$4 sm:$0xff]  }
 0x14b   : > { %943 = vmatprep.mubr.bf16.mxu0 %v4125_v2 }
 0x14c   : > { %v596_v25 = vadd.f32 %v580_v22, %v496_v24  ;;  %v3742_v22 = vld [vmem:[#allocation2 + $0x1a8] ss:$16 sps:$4 sm:$0xff]  }
 0x14d   : > { %v560_v27 = vpop.permute.xlu1 %559 }
 0x14e   : > { %v581_v28 = vmul.f32 %v4388_v47, %v560_v27  ;;  %v696_v30 = vadd.f32 %v680_v26, %v596_v25  ;;  %v3685_v47 = vld [vmem:[#allocation2 + $0xe0] ss:$16 sps:$4 sm:$0xff]   ;;  %v3746_v25 = vld [vmem:[#allocation2 + $0x184] ss:$16 sps:$4 sm:$0xff]   ;;  %v3750_v26 = vld [vmem:[#allocation2 + $0x18c] ss:$16 sps:$4 sm:$0xff]  }
 0x14f   : > { %1470 = vmatpush1.bf16.msra.mxu1 %v3685_v47 }
 0x150   : > { %v597_v32 = vadd.f32 %v581_v28, %v497_v29  ;;  %v719_v34 = vadd.f32 %v4405_v61, %v696_v30  ;;  %1471 = vmatprep.subr.bf16.mxu1 %v3686_v48  ;;  %v3748_v28 = vld [vmem:[#allocation2 + $0x188] ss:$16 sps:$4 sm:$0xff]   ;;  %v3751_v29 = vld [vmem:[#allocation2 + $0x180] ss:$16 sps:$4 sm:$0xff]  }
 0x152   : > { %v660_v31 = vpop.permute.xlu1 %659  ;;  %v735_v37 = vmax.f32 %v719_v34, 0.0 }
 0x153   : > { %v681_v33 = vmul.f32 %v4394_v49, %v660_v31  ;;  %v3688_v49 = vld [vmem:[#allocation2 + $0xc8] ss:$16 sps:$4 sm:$0xff]   ;;  %1472 = vmatpush1.bf16.msra.mxu1 %v3691_v51 }
 0x154   : > { %1513 = vmatpush1.bf16.msra.mxu0 %v3688_v49  ;;  %v3768_v49 = vld [vmem:[#allocation2 + $0x12c] ss:$16 sps:$4 sm:$0xff]  }
 0x155   : > { %v697_v35 = vadd.f32 %v681_v33, %v597_v32  ;;  %1514 = vmatprep.subr.bf16.mxu0 %v3696_v52  ;;  %v3752_v32 = vld [vmem:[#allocation2 + $0x164] ss:$16 sps:$4 sm:$0xff]   ;;  %v3756_v33 = vld [vmem:[#allocation2 + $0x16c] ss:$16 sps:$4 sm:$0xff]   ;;  %v3769_v52 = vld [vmem:[#allocation2 + $0x120] ss:$16 sps:$4 sm:$0xff]  }
 0x157   : > { %v720_v36 = vadd.f32 %v4405_v61, %v697_v35  ;;  %v3692_v61 = vld [vmem:[#allocation2 + $0xa4] ss:$16 sps:$4 sm:$0xff]   ;;  %v3754_v35 = vld [vmem:[#allocation2 + $0x168] ss:$16 sps:$4 sm:$0xff]  }
 0x158   : > { %1473 = vmatprep.subr.bf16.mxu1 %v3692_v61  ;;  %1515 = vmatpush1.bf16.msra.mxu0 %v3694_v45  ;;  %v3766_v61 = vld [vmem:[#allocation2 + $0x128] ss:$16 sps:$4 sm:$0xff]   ;;  %v3770_v45 = vld [vmem:[#allocation2 + $0x104] ss:$16 sps:$4 sm:$0xff]  }
 0x159   : > { %v736_v2 = vmax.f32 %v720_v36, 0.0  ;;  %1474 = vmatpush1.bf16.msra.mxu1 %v3697_v54  ;;  %1516 = vmatprep.subr.bf16.mxu0 %v3702_v56  ;;  %v3757_v36 = vld [vmem:[#allocation2 + $0x160] ss:$16 sps:$4 sm:$0xff]  }
 0x15a   : > { %1475 = vmatprep.subr.bf16.mxu1 %v3698_v55  ;;  %v3774_v55 = vld [vmem:[#allocation2 + $0x10c] ss:$16 sps:$4 sm:$0xff]  }
 0x15b   : > { %v744_v39 = vpack.c.bf16 %v736_v2, %v735_v37 }
 0x15c   : > { %1517 = vmatpush1.bf16.msra.mxu0 %v3700_v57  ;;  %v3772_v57 = vld [vmem:[#allocation2 + $0x108] ss:$16 sps:$4 sm:$0xff]  }
 0x15d   : > { %944 = vmatmul.mubr.bf16.gmra.mxu0 %v744_v39  ;;  %1476 = vmatpush1.bf16.msra.mxu1 %v3703_v58  ;;  %v3758_v39 = vld [vmem:[#allocation2 + $0x144] ss:$16 sps:$4 sm:$0xff]   ;;  %v3775_v58 = vld [vmem:[#allocation2 + $0x100] ss:$16 sps:$4 sm:$0xff]  }
 0x15e   : > { %1477 = vmatprep.subr.bf16.mxu1 %v3704_v59  ;;  %1518 = vmatprep.subr.bf16.mxu0 %v3708_v60  ;;  %v3778_v59 = vld [vmem:[#allocation5 + $0xe4] ss:$16 sps:$4 sm:$0xff]   ;;  %v3781_v60 = vld [vmem:[#allocation5 + $0xec] ss:$16 sps:$4 sm:$0xff]  }
 0x160   : > { %1519 = vmatpush1.bf16.msra.mxu0 %v3706_v62 }
 0x161   : > { %1478 = vmatpush1.bf16.msra.mxu1 %v3709_v63  ;;  %1520 = vmatprep.subr.bf16.mxu0 %v3714_v3 }
 0x162   : > { %1479 = vmatprep.subr.bf16.mxu1 %v3710_v1 }
 0x164   : > { %1521 = vmatpush1.bf16.msra.mxu0 %v3712_v53 }
 0x165   : > { %1480 = vmatpush1.bf16.msra.mxu1 %v3715_v4  ;;  %1522 = vmatprep.subr.bf16.mxu0 %v3720_v6 }
 0x166   : > { %1481 = vmatprep.subr.bf16.mxu1 %v3716_v5 }
 0x168   : > { %1523 = vmatpush1.bf16.msra.mxu0 %v3718_v0 }
 0x169   : > { %1482 = vmatpush1.bf16.msra.mxu1 %v3721_v7  ;;  %1524 = vmatprep.subr.bf16.mxu0 %v3726_v9 }
 0x16a   : > { %1483 = vmatprep.subr.bf16.mxu1 %v3722_v8 }
 0x16c   : > { %1525 = vmatpush1.bf16.msra.mxu0 %v3724_v10 }
 0x16d   : > { %1484 = vmatpush1.bf16.msra.mxu1 %v3727_v11  ;;  %1526 = vmatprep.subr.bf16.mxu0 %v3732_v13 }
 0x16e   : > { %1485 = vmatprep.subr.bf16.mxu1 %v3728_v12 }
 0x170   : > { %1527 = vmatpush2.bf16.msra.mxu0 %v3730_v14 }
 0x171   : > { %1486 = vmatpush2.bf16.msra.mxu1 %v3733_v15  ;;  %1528 = vmatprep.subr.bf16.mxu0 %v3738_v17 }
 0x172   : > { %1487 = vmatprep.subr.bf16.mxu1 %v3734_v16 }
 0x174   : > { %1529 = vmatpush2.bf16.msra.mxu0 %v3736_v18 }
 0x175   : > { %1488 = vmatpush2.bf16.msra.mxu1 %v3739_v19  ;;  %1530 = vmatprep.subr.bf16.mxu0 %v3744_v21 }
 0x176   : > { %1489 = vmatprep.subr.bf16.mxu1 %v3740_v20 }
 0x178   : > { %1531 = vmatpush2.bf16.msra.mxu0 %v3742_v22 }
 0x179   : > { %1490 = vmatpush2.bf16.msra.mxu1 %v3745_v23  ;;  %1532 = vmatprep.subr.bf16.mxu0 %v3750_v26 }
 0x17a   : > { %1491 = vmatprep.subr.bf16.mxu1 %v3746_v25 }
 0x17c   : > { %1533 = vmatpush2.bf16.msra.mxu0 %v3748_v28 }
 0x17d   : > { %1492 = vmatpush2.bf16.msra.mxu1 %v3751_v29  ;;  %1534 = vmatprep.subr.bf16.mxu0 %v3756_v33 }
 0x17e   : > { %1493 = vmatprep.subr.bf16.mxu1 %v3752_v32 }
 0x180   : > { %1535 = vmatpush2.bf16.msra.mxu0 %v3754_v35 }
 0x181   : > { %1494 = vmatpush2.bf16.msra.mxu1 %v3757_v36  ;;  %1536 = vmatprep.subr.bf16.mxu0 %v3762_v40 }
 0x182   : > { %1495 = vmatprep.subr.bf16.mxu1 %v3758_v39 }
 0x184   : > { %1537 = vmatpush2.bf16.msra.mxu0 %v3760_v43 }
 0x185   : > { %1496 = vmatpush2.bf16.msra.mxu1 %v3763_v46  ;;  %1538 = vmatprep.subr.bf16.mxu0 %v3768_v49 }
 0x186   : > { %1497 = vmatprep.subr.bf16.mxu1 %v3764_v50 }
 0x188   : > { %1539 = vmatpush2.bf16.msra.mxu0 %v3766_v61 }
 0x189   : > { %1498 = vmatpush2.bf16.msra.mxu1 %v3769_v52  ;;  %1540 = vmatprep.subr.bf16.mxu0 %v3774_v55 }
 0x18a   : > { %1499 = vmatprep.subr.bf16.mxu1 %v3770_v45 }
 0x18c   : > { %1541 = vmatpush2.bf16.msra.mxu0 %v3772_v57 }
 0x18d   : > { %1500 = vmatpush2.bf16.msra.mxu1 %v3775_v58  ;;  %2064 = vmatprep.subr.bf16.mxu0 %v3781_v60 }
 0x18e   : > { %1951 = vmatprep.subr.bf16.mxu1 %v3778_v59 }
 0x1a2   : > { %v4473_v24 = vpop.f32.mrf.mxu0 }
 0x1a4   : > { %v4475_v27 = vpop.f32.mrf.mxu0 }
 0x1a6   : > { %v4477_v30 = vpop.f32.mrf.mxu0 }
 0x1a7   : > { %v4481_v31 = vpack.c.bf16 %v4477_v30, %v4473_v24  ;;  %v954_v29 = vmax.f32 %v4473_v24, %v4477_v30 }
 0x1a8   : > { %v4483_v34 = vpop.f32.mrf.mxu0 }
 0x1a9   : > { %v4487_v37 = vpack.c.bf16 %v4483_v34, %v4475_v27  ;;  %v963_v35 = vmax.f32 %v4475_v27, %v4483_v34 }
 0x1ab   : > { %v4489_v2 = vpop.f32.mrf.mxu0 }
 0x1ac   : > { %v955_v43 = vmax.f32 %v954_v29, %v4489_v2 }
 0x1ad   : > { %v4491_v47 = vpop.f32.mrf.mxu0 }
 0x1ae   : > { %v964_v61 = vmax.f32 %v963_v35, %v4491_v47 }
 0x1af   : > { %v4493_v48 = vpop.f32.mrf.mxu0 }
 0x1b0   : > { %v4497_v51 = vpack.c.bf16 %v4493_v48, %v4489_v2  ;;  %v956_v24 = vmax.f32 %v955_v43, %v4493_v48 }
 0x1b1   : > { %v4499_v54 = vpop.f32.mrf.mxu0 }
 0x1b2   : > { %v4503_v56 = vpack.c.bf16 %v4499_v54, %v4491_v47  ;;  %v965_v27 = vmax.f32 %v964_v61, %v4499_v54  ;;  %v957_v2 = vrot.slane %v956_v24, 4 }
 0x1b4   : > { %v958_v47 = vmax.f32 %v956_v24, %v957_v2 }
 0x1be   : > { %v895_v62 = vpop.f32.mrf.mxu0 }
 0x1c0   : > { %v897_v63 = vpop.f32.mrf.mxu0 }
 0x1c2   : > { %v899_v1 = vpop.f32.mrf.mxu0 }
 0x1c3   : > { %v4505_v3 = vpack.c.bf16 %v899_v1, %v895_v62  ;;  %v972_v23 = vmax.f32 %v895_v62, %v899_v1  ;;  %v966_v62 = vrot.slane %v965_v27, 4 }
 0x1c4   : > { %v901_v53 = vpop.f32.mrf.mxu0 }
 0x1c5   : > { %v4507_v4 = vpack.c.bf16 %v901_v53, %v897_v63  ;;  %v981_v25 = vmax.f32 %v897_v63, %v901_v53 }
 0x1d1   : > { %v905_v5 = vpop.f32.mrf.mxu0 }
 0x1d2   : > { %v973_v32 = vmax.f32 %v972_v23, %v905_v5 }
 0x1d3   : > { %v907_v6 = vpop.f32.mrf.mxu0 }
 0x1d4   : > { %v982_v36 = vmax.f32 %v981_v25, %v907_v6 }
 0x1d5   : > { %v909_v0 = vpop.f32.mrf.mxu0 }
 0x1d6   : > { %v4509_v7 = vpack.c.bf16 %v909_v0, %v905_v5  ;;  %v974_v46 = vmax.f32 %v973_v32, %v909_v0 }
 0x1d7   : > { %v911_v8 = vpop.f32.mrf.mxu0 }
 0x1d8   : > { %v4511_v9 = vpack.c.bf16 %v911_v8, %v907_v6  ;;  %v983_v52 = vmax.f32 %v982_v36, %v911_v8  ;;  %v975_v34 = vrot.slane %v974_v46, 4  ;;  %v967_v6 = vmax.f32 %v965_v27, %v966_v62 }
 0x1da   : > { %v984_v58 = vrot.slane %v983_v52, 4  ;;  %v976_v63 = vmax.f32 %v974_v46, %v975_v34 }
 0x1dc   : > { %v985_v1 = vmax.f32 %v983_v52, %v984_v58  ;;  %v977_v0 = vrot.slane %v976_v63, 2 }
 0x1de   : > { %v986_v8 = vrot.slane %v985_v1, 2 }
 0x1e4   : > { %v915_v10 = vpop.f32.mrf.mxu0 }
 0x1e6   : > { %v917_v11 = vpop.f32.mrf.mxu0 }
 0x1e8   : > { %v919_v12 = vpop.f32.mrf.mxu0 }
 0x1e9   : > { %v4513_v13 = vpack.c.bf16 %v919_v12, %v915_v10  ;;  %v990_v26 = vmax.f32 %v915_v10, %v919_v12  ;;  %v959_v10 = vrot.slane %v958_v47, 2 }
 0x1ea   : > { %v921_v14 = vpop.f32.mrf.mxu0 }
 0x1eb   : > { %v4515_v15 = vpack.c.bf16 %v921_v14, %v917_v11  ;;  %v999_v33 = vmax.f32 %v917_v11, %v921_v14  ;;  %v968_v14 = vrot.slane %v967_v6, 2 }
 0x1f7   : > { %v925_v16 = vpop.f32.mrf.mxu0 }
 0x1f8   : > { %v991_v39 = vmax.f32 %v990_v26, %v925_v16  ;;  %v960_v26 = vmax.f32 %v958_v47, %v959_v10 }
 0x1f9   : > { %v927_v17 = vpop.f32.mrf.mxu0 }
 0x1fa   : > { %v1000_v50 = vmax.f32 %v999_v33, %v927_v17  ;;  %v969_v33 = vmax.f32 %v967_v6, %v968_v14  ;;  %v961_v52 = vrot.slane %v960_v26, 1 }
 0x1fb   : > { %v929_v18 = vpop.f32.mrf.mxu0 }
 0x1fc   : > { %v4517_v19 = vpack.c.bf16 %v929_v18, %v925_v16  ;;  %v992_v45 = vmax.f32 %v991_v39, %v929_v18  ;;  %v978_v16 = vmax.f32 %v976_v63, %v977_v0  ;;  %v987_v18 = vmax.f32 %v985_v1, %v986_v8 }
 0x1fd   : > { %v931_v20 = vpop.f32.mrf.mxu0  ;;  %v962_v2 = vmax.f32 %v960_v26, %v961_v52  ;;  %v3776_v52 = vld [vmem:[#allocation5 + $0xe0] ss:$16 sps:$4 sm:$0xff]  }
 0x1fe   : > { %v4519_v21 = vpack.c.bf16 %v931_v20, %v927_v17  ;;  %v1001_v30 = vmax.f32 %v1000_v50, %v931_v20  ;;  %v993_v59 = vrot.slane %v992_v45, 4  ;;  %v979_v43 = vrot.slane %v978_v16, 1 }
 0x1ff   : > { %v1026_v8 = vpack.c.bf16 %v962_v2, %v962_v2  ;;  %v3791_v2 = vld [vmem:[#allocation5 + $0xa8] ss:$16 sps:$4 sm:$0xff]  }
 0x200   : > { %v1002_v60 = vrot.slane %v1001_v30, 4  ;;  %v994_v53 = vmax.f32 %v992_v45, %v993_v59  ;;  %v970_v45 = vrot.slane %v969_v33, 1 }
 0x202   : > { %v1003_v5 = vmax.f32 %v1001_v30, %v1002_v60  ;;  %v995_v48 = vrot.slane %v994_v53, 2  ;;  %v980_v30 = vmax.f32 %v978_v16, %v979_v43  ;;  %v971_v62 = vmax.f32 %v969_v33, %v970_v45 }
 0x204   : > { %v1004_v11 = vrot.slane %v1003_v5, 2  ;;  %v996_v20 = vmax.f32 %v994_v53, %v995_v48  ;;  %v1028_v53 = vpack.c.bf16 %v980_v30, %v980_v30  ;;  %v1027_v10 = vpack.c.bf16 %v971_v62, %v971_v62  ;;  %v3782_v30 = vld [vmem:[#allocation5 + $0xc0] ss:$16 sps:$4 sm:$0xff]   ;;  %v3799_v62 = vld [vmem:[#allocation5 + $0x8c] ss:$16 sps:$4 sm:$0xff]  }
 0x206   : > { %v1005_v29 = vmax.f32 %v1003_v5, %v1004_v11  ;;  %v1130_v14 = vunpack.c.l.b16 %v1028_v53  ;;  %v1129_v26 = vunpack.c.l.b16 %v1027_v10  ;;  %v3802_v53 = vld [vmem:[#allocation5 + $0x64] ss:$16 sps:$4 sm:$0xff]  }
 0x207   : > { %v3814_v10 = vld [vmem:[#allocation5 + $0x24] ss:$16 sps:$4 sm:$0xff]  }
 0x20a   : > { %v935_v22 = vpop.f32.mrf.mxu0 }
 0x20c   : > { %v937_v28 = vpop.f32.mrf.mxu0 }
 0x20e   : > { %v939_v40 = vpop.f32.mrf.mxu0 }
 0x20f   : > { %v4526_v49 = vpack.c.bf16 %v939_v40, %v935_v22  ;;  %v1008_v54 = vmax.f32 %v935_v22, %v939_v40  ;;  %v988_v22 = vrot.slane %v987_v18, 1  ;;  %v997_v40 = vrot.slane %v996_v20, 1 }
 0x210   : > { %v941_v55 = vpop.f32.mrf.mxu0 }
 0x211   : > { %v4530_v57 = vpack.c.bf16 %v941_v55, %v937_v28  ;;  %v1017_v23 = vmax.f32 %v937_v28, %v941_v55  ;;  %v1006_v28 = vrot.slane %v1005_v29, 1  ;;  %v989_v27 = vmax.f32 %v987_v18, %v988_v22 }
 0x212   : > { %v998_v34 = vmax.f32 %v996_v20, %v997_v40 }
 0x213   : > { %v1007_v60 = vmax.f32 %v1005_v29, %v1006_v28  ;;  %v1029_v47 = vpack.c.bf16 %v989_v27, %v989_v27  ;;  %v3779_v28 = vld [vmem:[#allocation5 + $0xe8] ss:$16 sps:$4 sm:$0xff]  }
 0x214   : > { %v1030_v5 = vpack.c.bf16 %v998_v34, %v998_v34  ;;  %v3785_v27 = vld [vmem:[#allocation5 + $0xc8] ss:$16 sps:$4 sm:$0xff]   ;;  %v3790_v34 = vld [vmem:[#allocation5 + $0xa4] ss:$16 sps:$4 sm:$0xff]  }
 0x215   : > { %v1031_v48 = vpack.c.bf16 %v1007_v60, %v1007_v60  ;;  %v3796_v60 = vld [vmem:[#allocation5 + $0x84] ss:$16 sps:$4 sm:$0xff]  }
 0x216   : > { %v1132_v16 = vunpack.c.l.b16 %v1030_v5  ;;  %v3803_v5 = vld [vmem:[#allocation5 + $0x68] ss:$16 sps:$4 sm:$0xff]  }
 0x21d   : > { %v945_v12 = vpop.f32.mrf.mxu0 }
 0x21e   : > { %v1009_v25 = vmax.f32 %v1008_v54, %v945_v12  ;;  %v1131_v54 = vunpack.c.l.b16 %v1029_v47  ;;  %v3800_v47 = vld [vmem:[#allocation5 + $0x60] ss:$16 sps:$4 sm:$0xff]  }
 0x21f   : > { %v4533_v17 = vpop.f32.mrf.mxu0 }
 0x220   : > { %v1018_v35 = vmax.f32 %v1017_v23, %v4533_v17  ;;  %v1128_v23 = vunpack.c.l.b16 %v1026_v8  ;;  %v3806_v8 = vld [vmem:[#allocation5 + $0x40] ss:$16 sps:$4 sm:$0xff]  }
 0x221   : > { %v949_v32 = vpop.f32.mrf.mxu0 }
 0x222   : > { %v1010_v36 = vmax.f32 %v1009_v25, %v949_v32  ;;  %v4536_v39 = vpack.c.bf16 %v949_v32, %v945_v12  ;;  %v1133_v25 = vunpack.c.l.b16 %v1031_v48  ;;  %v1137_v33 = vsel %vm1136_vm0, %v1130_v14, %v1128_v23  ;;  %v3809_v48 = vld [vmem:[#allocation5 + $0x48] ss:$16 sps:$4 sm:$0xff]   ;;  %v3826_v23 = vld [vmem:[#allocation5 + $0x1e4] ss:$16 sps:$4 sm:$0xff]  }
 0x223   : > { %v4538_v46 = vpop.f32.mrf.mxu0  ;;  %v1139_v43 = vsel %vm1138_vm1, %v1132_v16, %v1137_v33  ;;  %v3815_v14 = vld [vmem:[#allocation5 + $0x28] ss:$16 sps:$4 sm:$0xff]   ;;  %v3823_v16 = vld [vmem:[#allocation5 + $0xc] ss:$16 sps:$4 sm:$0xff]  }
 0x224   : > { %v1011_v50 = vrot.slane %v1010_v36, 4  ;;  %v1019_v61 = vmax.f32 %v1018_v35, %v4538_v46  ;;  %v3835_v33 = vld [vmem:[#allocation5 + $0x1cc] ss:$16 sps:$4 sm:$0xff]  }
 0x226   : > { %v1012_v55 = vmax.f32 %v1010_v36, %v1011_v50  ;;  %v1020_v24 = vrot.slane %v1019_v61, 4  ;;  %v1142_v36 = vsel %vm1136_vm0, %v1131_v54, %v1129_v26  ;;  %v3820_v54 = vld [vmem:[#allocation5 + $0x4] ss:$16 sps:$4 sm:$0xff]   ;;  %v3824_v26 = vld [vmem:[#allocation5 + $0x1e0] ss:$16 sps:$4 sm:$0xff]  }
 0x227   : > { %v1143_v22 = vsel %vm1138_vm1, %v1133_v25, %v1142_v36  ;;  %v3829_v25 = vld [vmem:[#allocation5 + $0x1ec] ss:$16 sps:$4 sm:$0xff]   ;;  %v3833_v36 = vld [vmem:[#allocation5 + $0x1c8] ss:$16 sps:$4 sm:$0xff]  }
 0x228   : > { %v1013_v58 = vrot.slane %v1012_v55, 2  ;;  %v1021_v59 = vmax.f32 %v1019_v61, %v1020_v24  ;;  %v3787_v24 = vld [vmem:[#allocation5 + $0xcc] ss:$16 sps:$4 sm:$0xff]  }
 0x22a   : > { %v1014_v63 = vmax.f32 %v1012_v55, %v1013_v58  ;;  %v1022_v1 = vrot.slane %v1021_v59, 2  ;;  %v3784_v55 = vld [vmem:[#allocation5 + $0xc4] ss:$16 sps:$4 sm:$0xff]   ;;  %v3793_v58 = vld [vmem:[#allocation5 + $0xac] ss:$16 sps:$4 sm:$0xff]  }
 0x22c   : > { %v1015_v6 = vrot.slane %v1014_v63, 1  ;;  %v1023_v0 = vmax.f32 %v1021_v59, %v1022_v1  ;;  %v3788_v59 = vld [vmem:[#allocation5 + $0xa0] ss:$16 sps:$4 sm:$0xff]   ;;  %v3797_v1 = vld [vmem:[#allocation5 + $0x88] ss:$16 sps:$4 sm:$0xff]  }
 0x22e   : > { %v1016_v11 = vmax.f32 %v1014_v63, %v1015_v6  ;;  %v1024_v12 = vrot.slane %v1023_v0, 1  ;;  %v3794_v63 = vld [vmem:[#allocation5 + $0x80] ss:$16 sps:$4 sm:$0xff]   ;;  %v3808_v6 = vld [vmem:[#allocation5 + $0x44] ss:$16 sps:$4 sm:$0xff]  }
 0x230   : > { %v1032_v18 = vpack.c.bf16 %v1016_v11, %v1016_v11  ;;  %v1025_v20 = vmax.f32 %v1023_v0, %v1024_v12  ;;  %v3811_v0 = vld [vmem:[#allocation5 + $0x4c] ss:$16 sps:$4 sm:$0xff]   ;;  %v3812_v12 = vld [vmem:[#allocation5 + $0x20] ss:$16 sps:$4 sm:$0xff]  }
 0x231   : > { %v3817_v11 = vld [vmem:[#allocation5 + $0x2c] ss:$16 sps:$4 sm:$0xff]  }
 0x232   : > { %v1033_v29 = vpack.c.bf16 %v1025_v20, %v1025_v20  ;;  %v1134_v32 = vunpack.c.l.b16 %v1032_v18  ;;  %v3818_v18 = vld [vmem:[#allocation5] ss:$16 sps:$4 sm:$0xff]   ;;  %v3821_v20 = vld [vmem:[#allocation5 + $0x8] ss:$16 sps:$4 sm:$0xff]  }
 0x234   : > { %v1135_v35 = vunpack.c.l.b16 %v1033_v29  ;;  %v1141_v40 = vsel %vm1140_vm2, %v1134_v32, %v1139_v43  ;;  %v3827_v29 = vld [vmem:[#allocation5 + $0x1e8] ss:$16 sps:$4 sm:$0xff]   ;;  %v3832_v32 = vld [vmem:[#allocation5 + $0x1c4] ss:$16 sps:$4 sm:$0xff]  }
 0x235   : > { %v1145_v45 = vpack.c.b16 %v1141_v40, %v1141_v40  ;;  %v3838_v43 = vld [vmem:[#allocation5 + $0x1a4] ss:$16 sps:$4 sm:$0xff]   ;;  %v3836_v40 = vld [vmem:[#allocation5 + $0x1a0] ss:$16 sps:$4 sm:$0xff]  }
 0x236   : > { %v1144_v50 = vsel %vm1140_vm2, %v1135_v35, %v1143_v22  ;;  %v3830_v35 = vld [vmem:[#allocation5 + $0x1c0] ss:$16 sps:$4 sm:$0xff]   ;;  %v3841_v22 = vld [vmem:[#allocation5 + $0x1ac] ss:$16 sps:$4 sm:$0xff]  }
 0x237   : > { %v1146_v61 = vpack.c.b16 %v1144_v50, %v1144_v50  ;;  %v3839_v50 = vld [vmem:[#allocation5 + $0x1a8] ss:$16 sps:$4 sm:$0xff]  }
 0x239   : > { %1501 = vmatprep.mubr.bf16.mxu1 %v1146_v61  ;;  %1542 = vmatprep.mubr.bf16.mxu0 %v1146_v61  ;;  %v3844_v61 = vld [vmem:[#allocation5 + $0x184] ss:$16 sps:$4 sm:$0xff]  }
 0x23a   : > { %1502 = vmatmul.mubr.bf16.vlgmr.msra.gmra.mxu1 %v1145_v45  ;;  %1543 = vmatmul.mubr.bf16.vlgmr.msra.gmra.mxu0 %v1145_v45  ;;  %v3845_v45 = vld [vmem:[#allocation5 + $0x188] ss:$16 sps:$4 sm:$0xff]  }
 0x23b   : > { %1952 = vmatpush1.bf16.msra.mxu1 %v3776_v52  ;;  %2065 = vmatpush1.bf16.msra.mxu0 %v3779_v28  ;;  %v3847_v52 = vld [vmem:[#allocation5 + $0x18c] ss:$16 sps:$4 sm:$0xff]   ;;  %v3842_v28 = vld [vmem:[#allocation5 + $0x180] ss:$16 sps:$4 sm:$0xff]  }
 0x23c   : > { %1983 = vmatprep.mubr.bf16.mxu1 %v4487_v37  ;;  %2096 = vmatprep.mubr.bf16.mxu0 %v4487_v37  ;;  %v3805_v37 = vld [vmem:[#allocation5 + $0x6c] ss:$16 sps:$4 sm:$0xff]  }
 0x23d   : > { %1953 = vmatprep.subr.bf16.mxu1 %v3784_v55  ;;  %2066 = vmatprep.subr.bf16.mxu0 %v3787_v24  ;;  %v3850_v55 = vld [vmem:[#allocation5 + $0x164] ss:$16 sps:$4 sm:$0xff]   ;;  %v3853_v24 = vld [vmem:[#allocation5 + $0x16c] ss:$16 sps:$4 sm:$0xff]  }
 0x23f   : > { %1954 = vmatpush1.bf16.msra.mxu1 %v3782_v30  ;;  %2067 = vmatpush1.bf16.msra.mxu0 %v3785_v27  ;;  %v3848_v30 = vld [vmem:[#allocation5 + $0x160] ss:$16 sps:$4 sm:$0xff]   ;;  %v3851_v27 = vld [vmem:[#allocation5 + $0x168] ss:$16 sps:$4 sm:$0xff]  }
 0x240   : > { %1955 = vmatprep.subr.bf16.mxu1 %v3790_v34  ;;  %2068 = vmatprep.subr.bf16.mxu0 %v3793_v58  ;;  %v3856_v34 = vld [vmem:[#allocation5 + $0x144] ss:$16 sps:$4 sm:$0xff]   ;;  %v3859_v58 = vld [vmem:[#allocation5 + $0x14c] ss:$16 sps:$4 sm:$0xff]  }
 0x243   : > { %1956 = vmatpush1.bf16.msra.mxu1 %v3788_v59  ;;  %2069 = vmatpush1.bf16.msra.mxu0 %v3791_v2  ;;  %v3854_v59 = vld [vmem:[#allocation5 + $0x140] ss:$16 sps:$4 sm:$0xff]   ;;  %v3857_v2 = vld [vmem:[#allocation5 + $0x148] ss:$16 sps:$4 sm:$0xff]  }
 0x244   : > { %1957 = vmatprep.subr.bf16.mxu1 %v3796_v60  ;;  %2070 = vmatprep.subr.bf16.mxu0 %v3799_v62  ;;  %v3862_v60 = vld [vmem:[#allocation5 + $0x124] ss:$16 sps:$4 sm:$0xff]   ;;  %v3865_v62 = vld [vmem:[#allocation5 + $0x12c] ss:$16 sps:$4 sm:$0xff]  }
 0x247   : > { %1958 = vmatpush1.bf16.msra.mxu1 %v3794_v63  ;;  %2071 = vmatpush1.bf16.msra.mxu0 %v3797_v1  ;;  %v3860_v63 = vld [vmem:[#allocation5 + $0x120] ss:$16 sps:$4 sm:$0xff]   ;;  %v3863_v1 = vld [vmem:[#allocation5 + $0x128] ss:$16 sps:$4 sm:$0xff]  }
 0x248   : > { %1959 = vmatprep.subr.bf16.mxu1 %v3802_v53  ;;  %2072 = vmatprep.subr.bf16.mxu0 %v3805_v37  ;;  %v3868_v53 = vld [vmem:[#allocation5 + $0x104] ss:$16 sps:$4 sm:$0xff]   ;;  %v3871_v37 = vld [vmem:[#allocation5 + $0x10c] ss:$16 sps:$4 sm:$0xff]  }
 0x24b   : > { %1960 = vmatpush1.bf16.msra.mxu1 %v3800_v47  ;;  %2073 = vmatpush1.bf16.msra.mxu0 %v3803_v5  ;;  %v3866_v47 = vld [vmem:[#allocation5 + $0x100] ss:$16 sps:$4 sm:$0xff]   ;;  %v3869_v5 = vld [vmem:[#allocation5 + $0x108] ss:$16 sps:$4 sm:$0xff]  }
 0x24c   : > { %1961 = vmatprep.subr.bf16.mxu1 %v3808_v6  ;;  %2074 = vmatprep.subr.bf16.mxu0 %v3811_v0  ;;  %v3872_v6 = vld [vmem:[#allocation7 + $0x70] ss:$8 sps:$4 sm:$0xff]   ;;  %v3874_v0 = vld [vmem:[#allocation7 + $0x74] ss:$8 sps:$4 sm:$0xff]  }
 0x24f   : > { %1962 = vmatpush1.bf16.msra.mxu1 %v3806_v8  ;;  %2075 = vmatpush1.bf16.msra.mxu0 %v3809_v48  ;;  %v4557_v8 = vld [vmem:[#allocation7 + $0x170] ss:$8 sps:$4 sm:$0xff]   ;;  %v4559_v48 = vld [vmem:[#allocation7 + $0x174] ss:$8 sps:$4 sm:$0xff]  }
 0x250   : > { %1963 = vmatprep.subr.bf16.mxu1 %v3814_v10  ;;  %2076 = vmatprep.subr.bf16.mxu0 %v3817_v11  ;;  %v3880_v10 = vld [vmem:[#allocation7 + $0x64] ss:$8 sps:$4 sm:$0xff]   ;;  %v4569_v11 = vld [vmem:[#allocation7 + $0x154] ss:$8 sps:$4 sm:$0xff]  }
 0x253   : > { %1964 = vmatpush1.bf16.msra.mxu1 %v3812_v12  ;;  %2077 = vmatpush1.bf16.msra.mxu0 %v3815_v14  ;;  %v3884_v12 = vld [vmem:[#allocation7 + $0x50] ss:$8 sps:$4 sm:$0xff]  }
 0x254   : > { %1965 = vmatprep.subr.bf16.mxu1 %v3820_v54  ;;  %2078 = vmatprep.subr.bf16.mxu0 %v3823_v16  ;;  %v4575_v14 = vld [vmem:[#allocation7 + $0x150] ss:$8 sps:$4 sm:$0xff]   ;;  %v3892_v54 = vld [vmem:[#allocation7 + $0x44] ss:$8 sps:$4 sm:$0xff]  }
 0x255   : > { %v4578_v16 = vld [vmem:[#allocation7 + $0x144] ss:$8 sps:$4 sm:$0xff]  }
 0x257   : > { %1966 = vmatpush1.bf16.msra.mxu1 %v3818_v18  ;;  %2079 = vmatpush1.bf16.msra.mxu0 %v3821_v20  ;;  %v3898_v18 = vld [vmem:[#allocation7 + $0x34] ss:$8 sps:$4 sm:$0xff]  }
 0x258   : > { %1967 = vmatprep.subr.bf16.mxu1 %v3826_v23  ;;  %2080 = vmatprep.subr.bf16.mxu0 %v3829_v25  ;;  %v4585_v20 = vld [vmem:[#allocation7 + $0x134] ss:$8 sps:$4 sm:$0xff]   ;;  %v3896_v23 = vld [vmem:[#allocation7 + $0x30] ss:$8 sps:$4 sm:$0xff]  }
 0x259   : > { %v4591_v25 = vld [vmem:[#allocation7 + $0x130] ss:$8 sps:$4 sm:$0xff]  }
 0x25b   : > { %1968 = vmatpush2.bf16.msra.mxu1 %v3824_v26  ;;  %2081 = vmatpush2.bf16.msra.mxu0 %v3827_v29  ;;  %v3904_v26 = vld [vmem:[#allocation7 + $0x24] ss:$8 sps:$4 sm:$0xff]  }
 0x25c   : > { %1969 = vmatprep.subr.bf16.mxu1 %v3832_v32  ;;  %2082 = vmatprep.subr.bf16.mxu0 %v3835_v33  ;;  %v4594_v29 = vld [vmem:[#allocation7 + $0x124] ss:$8 sps:$4 sm:$0xff]   ;;  %v3910_v32 = vld [vmem:[#allocation7 + $0x14] ss:$8 sps:$4 sm:$0xff]  }
 0x25d   : > { %v4601_v33 = vld [vmem:[#allocation7 + $0x114] ss:$8 sps:$4 sm:$0xff]  }
 0x25f   : > { %1970 = vmatpush2.bf16.msra.mxu1 %v3830_v35  ;;  %2083 = vmatpush2.bf16.msra.mxu0 %v3833_v36  ;;  %v3908_v35 = vld [vmem:[#allocation7 + $0x10] ss:$8 sps:$4 sm:$0xff]  }
 0x260   : > { %1971 = vmatprep.subr.bf16.mxu1 %v3838_v43  ;;  %2084 = vmatprep.subr.bf16.mxu0 %v3841_v22  ;;  %v4607_v36 = vld [vmem:[#allocation7 + $0x110] ss:$8 sps:$4 sm:$0xff]   ;;  %v3916_v43 = vld [vmem:[#allocation7 + $0x4] ss:$8 sps:$4 sm:$0xff]  }
 0x261   : > { %v4610_v22 = vld [vmem:[#allocation7 + $0x104] ss:$8 sps:$4 sm:$0xff]  }
 0x263   : > { %1972 = vmatpush2.bf16.msra.mxu1 %v3836_v40  ;;  %2085 = vmatpush2.bf16.msra.mxu0 %v3839_v50  ;;  %v3922_v40 = vld [vmem:[#allocation7 + $0xf4] ss:$8 sps:$4 sm:$0xff]  }
 0x264   : > { %1973 = vmatprep.subr.bf16.mxu1 %v3844_v61  ;;  %2086 = vmatprep.subr.bf16.mxu0 %v3847_v52  ;;  %v4617_v50 = vld [vmem:[#allocation7 + $0x1f4] ss:$8 sps:$4 sm:$0xff]   ;;  %v3920_v61 = vld [vmem:[#allocation7 + $0xf0] ss:$8 sps:$4 sm:$0xff]  }
 0x265   : > { %v4623_v52 = vld [vmem:[#allocation7 + $0x1f0] ss:$8 sps:$4 sm:$0xff]  }
 0x267   : > { %1974 = vmatpush2.bf16.msra.mxu1 %v3842_v28  ;;  %2087 = vmatpush2.bf16.msra.mxu0 %v3845_v45  ;;  %v3928_v28 = vld [vmem:[#allocation7 + $0xe4] ss:$8 sps:$4 sm:$0xff]  }
 0x268   : > { %1975 = vmatprep.subr.bf16.mxu1 %v3850_v55  ;;  %2088 = vmatprep.subr.bf16.mxu0 %v3853_v24  ;;  %v4626_v45 = vld [vmem:[#allocation7 + $0x1e4] ss:$8 sps:$4 sm:$0xff]   ;;  %v1566_v55 = vpack.c.bf16 %v4538_v46, %v4533_v17  ;;  %v3934_v24 = vld [vmem:[#allocation7 + $0xd4] ss:$8 sps:$4 sm:$0xff]   ;;  %v4639_v17 = vld [vmem:[#allocation7 + $0x1d0] ss:$8 sps:$4 sm:$0xff]  }
 0x269   : > { %v3940_v46 = vld [vmem:[#allocation7 + $0xc4] ss:$8 sps:$4 sm:$0xff]  }
 0x26b   : > { %1976 = vmatpush2.bf16.msra.mxu1 %v3848_v30  ;;  %2089 = vmatpush2.bf16.msra.mxu0 %v3851_v27  ;;  %v4635_v30 = vld [vmem:[#allocation7 + $0x1d4] ss:$8 sps:$4 sm:$0xff]   ;;  %v3932_v27 = vld [vmem:[#allocation7 + $0xd0] ss:$8 sps:$4 sm:$0xff]  }
 0x26c   : > { %1977 = vmatprep.subr.bf16.mxu1 %v3856_v34  ;;  %2090 = vmatprep.subr.bf16.mxu0 %v3859_v58  ;;  %v4642_v34 = vld [vmem:[#allocation7 + $0x1c4] ss:$8 sps:$4 sm:$0xff]   ;;  %v4645_v58 = vld [vmem:[#allocation7 + $0x1c0] ss:$8 sps:$4 sm:$0xff]  }
 0x26f   : > { %1978 = vmatpush2.bf16.msra.mxu1 %v3854_v59  ;;  %2091 = vmatpush2.bf16.msra.mxu0 %v3857_v2  ;;  %v3946_v59 = vld [vmem:[#allocation7 + $0xb4] ss:$8 sps:$4 sm:$0xff]  }
 0x270   : > { %1979 = vmatprep.subr.bf16.mxu1 %v3862_v60  ;;  %2092 = vmatprep.subr.bf16.mxu0 %v3865_v62  ;;  %v4649_v2 = vld [vmem:[#allocation7 + $0x1b4] ss:$8 sps:$4 sm:$0xff]   ;;  %v3944_v60 = vld [vmem:[#allocation7 + $0xb0] ss:$8 sps:$4 sm:$0xff]  }
 0x271   : > { %4856 = vst [vmem:[#allocation12_spill] sm:$0xff] %v4649_v2  ;;  %v4653_v62 = vld [vmem:[#allocation7 + $0x1b0] ss:$8 sps:$4 sm:$0xff]  }
 0x272   : > { %4857 = vst [vmem:[#allocation13_spill] sm:$0xff] %v4653_v62 }
 0x273   : > { %1980 = vmatpush2.bf16.msra.mxu1 %v3860_v63  ;;  %2093 = vmatpush2.bf16.msra.mxu0 %v3863_v1  ;;  %v3952_v63 = vld [vmem:[#allocation7 + $0xa4] ss:$8 sps:$4 sm:$0xff]  }
 0x274   : > { %1981 = vmatprep.subr.bf16.mxu1 %v3868_v53  ;;  %2094 = vmatprep.subr.bf16.mxu0 %v3871_v37  ;;  %v4657_v1 = vld [vmem:[#allocation7 + $0x1a4] ss:$8 sps:$4 sm:$0xff]   ;;  %v4659_v53 = vld [vmem:[#allocation7 + $0x1a0] ss:$8 sps:$4 sm:$0xff]   ;;  %v3958_v37 = vld [vmem:[#allocation7 + $0x94] ss:$8 sps:$4 sm:$0xff]  }
 0x275   : > { %4858 = vst [vmem:[#allocation14_spill] sm:$0xff] %v4657_v1  ;;  %4859 = vst [vmem:[#allocation15_spill] sm:$0xff] %v4659_v53 }
 0x277   : > { %1982 = vmatpush2.bf16.msra.mxu1 %v3866_v47  ;;  %2095 = vmatpush2.bf16.msra.mxu0 %v3869_v5  ;;  %v4663_v47 = vld [vmem:[#allocation7 + $0x194] ss:$8 sps:$4 sm:$0xff]   ;;  %v3956_v5 = vld [vmem:[#allocation7 + $0x90] ss:$8 sps:$4 sm:$0xff]  }
 0x278   : > { %2839 = vmatprep.subr.bf16.mxu1 %v3874_v0  ;;  %2952 = vmatprep.subr.bf16.mxu0 %v4559_v48  ;;  %4860 = vst [vmem:[#allocation16_spill] sm:$0xff] %v4663_v47  ;;  %v3964_v0 = vld [vmem:[#allocation7 + $0x84] ss:$8 sps:$4 sm:$0xff]  }
 0x27a   : > { %1984 = vmatmul.mubr.bf16.vlgmr.msra.gmra.mxu1 %v4481_v31  ;;  %2097 = vmatmul.mubr.bf16.vlgmr.msra.gmra.mxu0 %v4481_v31  ;;  %v3878_v31 = vld [vmem:[#allocation7 + $0x60] ss:$8 sps:$4 sm:$0xff]  }
 0x27b   : > { %1993 = vmatprep.mubr.bf16.mxu1 %v4503_v56  ;;  %2106 = vmatprep.mubr.bf16.mxu0 %v4503_v56  ;;  %v4562_v56 = vld [vmem:[#allocation7 + $0x164] ss:$8 sps:$4 sm:$0xff]  }
 0x27c   : > { %2840 = vmatpush1.bf16.msra.mxu1 %v3872_v6  ;;  %2953 = vmatpush1.bf16.msra.mxu0 %v4557_v8  ;;  %v4665_v6 = vld [vmem:[#allocation7 + $0x190] ss:$8 sps:$4 sm:$0xff]  }
 0x27d   : > { %2841 = vmatprep.subr.bf16.mxu1 %v3880_v10  ;;  %2954 = vmatprep.subr.bf16.mxu0 %v4562_v56  ;;  %4861 = vst [vmem:[#allocation17_spill] sm:$0xff] %v4665_v6  ;;  %v4669_v10 = vld [vmem:[#allocation7 + $0x184] ss:$8 sps:$4 sm:$0xff]  }
 0x27e   : > { %4862 = vst [vmem:[#allocation18_spill] sm:$0xff] %v4669_v10 }
 0x280   : > { %2842 = vmatpush1.bf16.msra.mxu1 %v3878_v31  ;;  %v3962_v31 = vld [vmem:[#allocation7 + $0x80] ss:$8 sps:$4 sm:$0xff]  }
 0x282   : > { %1994 = vmatmul.mubr.bf16.gmra.mxu1 %v4497_v51  ;;  %2107 = vmatmul.mubr.bf16.gmra.mxu0 %v4497_v51  ;;  %v4565_v51 = vld [vmem:[#allocation7 + $0x160] ss:$8 sps:$4 sm:$0xff]  }
 0x283   : > { %2003 = vmatprep.mubr.bf16.mxu1 %v4507_v4  ;;  %2116 = vmatprep.mubr.bf16.mxu0 %v4507_v4  ;;  %v3886_v4 = vld [vmem:[#allocation7 + $0x54] ss:$8 sps:$4 sm:$0xff]  }
 0x284   : > { %2955 = vmatpush1.bf16.msra.mxu0 %v4565_v51  ;;  %2843 = vmatprep.subr.bf16.mxu1 %v3886_v4  ;;  %v4671_v4 = vld [vmem:[#allocation7 + $0x180] ss:$8 sps:$4 sm:$0xff]  }
 0x285   : > { %2956 = vmatprep.subr.bf16.mxu0 %v4569_v11  ;;  %2844 = vmatpush1.bf16.msra.mxu1 %v3884_v12  ;;  %4863 = vst [vmem:[#allocation19_spill] sm:$0xff] %v4671_v4 }
 0x286   : > { %2845 = vmatprep.subr.bf16.mxu1 %v3892_v54 }
 0x288   : > { %2957 = vmatpush1.bf16.msra.mxu0 %v4575_v14 }
 0x289   : > { %2958 = vmatprep.subr.bf16.mxu0 %v4578_v16 }
 0x28a   : > { %2004 = vmatmul.mubr.bf16.gmra.mxu1 %v4505_v3  ;;  %2117 = vmatmul.mubr.bf16.gmra.mxu0 %v4505_v3  ;;  %v3890_v3 = vld [vmem:[#allocation7 + $0x40] ss:$8 sps:$4 sm:$0xff]  }
 0x28b   : > { %2013 = vmatprep.mubr.bf16.mxu1 %v4511_v9  ;;  %2126 = vmatprep.mubr.bf16.mxu0 %v4511_v9  ;;  %v4581_v9 = vld [vmem:[#allocation7 + $0x140] ss:$8 sps:$4 sm:$0xff]  }
 0x28c   : > { %2846 = vmatpush1.bf16.msra.mxu1 %v3890_v3  ;;  %2959 = vmatpush1.bf16.msra.mxu0 %v4581_v9 }
 0x28d   : > { %2847 = vmatprep.subr.bf16.mxu1 %v3898_v18  ;;  %2960 = vmatprep.subr.bf16.mxu0 %v4585_v20 }
 0x290   : > { %2848 = vmatpush1.bf16.msra.mxu1 %v3896_v23  ;;  %2961 = vmatpush1.bf16.msra.mxu0 %v4591_v25 }
 0x291   : > { %2849 = vmatprep.subr.bf16.mxu1 %v3904_v26  ;;  %2962 = vmatprep.subr.bf16.mxu0 %v4594_v29 }
 0x292   : > { %2014 = vmatmul.mubr.bf16.gmra.mxu1 %v4509_v7  ;;  %2127 = vmatmul.mubr.bf16.gmra.mxu0 %v4509_v7  ;;  %v3902_v7 = vld [vmem:[#allocation7 + $0x20] ss:$8 sps:$4 sm:$0xff]  }
 0x293   : > { %2023 = vmatprep.mubr.bf16.mxu1 %v4515_v15  ;;  %2136 = vmatprep.mubr.bf16.mxu0 %v4515_v15  ;;  %v4597_v15 = vld [vmem:[#allocation7 + $0x120] ss:$8 sps:$4 sm:$0xff]  }
 0x294   : > { %2850 = vmatpush1.bf16.msra.mxu1 %v3902_v7  ;;  %2963 = vmatpush1.bf16.msra.mxu0 %v4597_v15 }
 0x295   : > { %2851 = vmatprep.subr.bf16.mxu1 %v3910_v32  ;;  %2964 = vmatprep.subr.bf16.mxu0 %v4601_v33 }
 0x298   : > { %2852 = vmatpush1.bf16.msra.mxu1 %v3908_v35  ;;  %2965 = vmatpush1.bf16.msra.mxu0 %v4607_v36  ;;  %v4677_v35 = vsub.s32 3, %v4371_v38 }
 0x299   : > { %2853 = vmatprep.subr.bf16.mxu1 %v3916_v43  ;;  %2966 = vmatprep.subr.bf16.mxu0 %v4610_v22  ;;  %v1098_v43 = vld [vmem:[%s4834_s6] sm:$0xf] }
 0x29a   : > { %2024 = vmatmul.mubr.bf16.gmra.mxu1 %v4513_v13  ;;  %2137 = vmatmul.mubr.bf16.gmra.mxu0 %v4513_v13  ;;  %v3914_v13 = vld [vmem:[#allocation7] ss:$8 sps:$4 sm:$0xff]  }
 0x29b   : > { %2033 = vmatprep.mubr.bf16.mxu1 %v4519_v21  ;;  %2146 = vmatprep.mubr.bf16.mxu0 %v4519_v21  ;;  %v4613_v21 = vld [vmem:[#allocation7 + $0x100] ss:$8 sps:$4 sm:$0xff]  }
 0x29c   : > { %2854 = vmatpush1.bf16.msra.mxu1 %v3914_v13  ;;  %2967 = vmatpush1.bf16.msra.mxu0 %v4613_v21  ;;  %v1107_v13 = vrot.slane %v1098_v43, %v4375_v41 }
 0x29d   : > { %2855 = vmatprep.subr.bf16.mxu1 %v3922_v40  ;;  %2968 = vmatprep.subr.bf16.mxu0 %v4617_v50  ;;  %v4126_v40 = vmov 1966171168  }
 0x2a0   : > { %2856 = vmatpush2.bf16.msra.mxu1 %v3920_v61  ;;  %2969 = vmatpush2.bf16.msra.mxu0 %v4623_v52  ;;  %v2184_v61 = vunpack.c.l.s4 %v4126_v40 }
 0x2a1   : > { %2857 = vmatprep.subr.bf16.mxu1 %v3928_v28  ;;  %2970 = vmatprep.subr.bf16.mxu0 %v4626_v45  ;;  %v1103_v28 = vrot.slane %v1098_v43, %v4378_v42 }
 0x2a2   : > { %2034 = vmatmul.mubr.bf16.gmra.mxu1 %v4517_v19  ;;  %2147 = vmatmul.mubr.bf16.gmra.mxu0 %v4517_v19  ;;  %v3926_v19 = vld [vmem:[#allocation7 + $0xe0] ss:$8 sps:$4 sm:$0xff]  }
 0x2a3   : > { %2043 = vmatprep.mubr.bf16.mxu1 %v4530_v57  ;;  %2156 = vmatprep.mubr.bf16.mxu0 %v4530_v57  ;;  %v4631_v57 = vld [vmem:[#allocation7 + $0x1e0] ss:$8 sps:$4 sm:$0xff]  }
 0x2a4   : > { %2858 = vmatpush2.bf16.msra.mxu1 %v3926_v19  ;;  %2971 = vmatpush2.bf16.msra.mxu0 %v4631_v57  ;;  %v1111_v19 = vrot.slane %v1098_v43, %v4384_v44 }
 0x2a5   : > { %2859 = vmatprep.subr.bf16.mxu1 %v3934_v24  ;;  %2972 = vmatprep.subr.bf16.mxu0 %v4635_v30  ;;  %v2185_v24 = vunpack.c.0.s8 %v2184_v61 }
 0x2a8   : > { %2860 = vmatpush2.bf16.msra.mxu1 %v3932_v27  ;;  %2973 = vmatpush2.bf16.msra.mxu0 %v4639_v17 }
 0x2a9   : > { %2861 = vmatprep.subr.bf16.mxu1 %v3940_v46  ;;  %2974 = vmatprep.subr.bf16.mxu0 %v4642_v34 }
 0x2aa   : > { %2044 = vmatmul.mubr.bf16.gmra.mxu1 %v4526_v49  ;;  %2157 = vmatmul.mubr.bf16.gmra.mxu0 %v4526_v49  ;;  %v3938_v49 = vld [vmem:[#allocation7 + $0xc0] ss:$8 sps:$4 sm:$0xff]  }
 0x2ab   : > { %2053 = vmatprep.mubr.bf16.mxu1 %v1566_v55  ;;  %2166 = vmatprep.mubr.bf16.mxu0 %v1566_v55 }
 0x2ac   : > { %2862 = vmatpush2.bf16.msra.mxu1 %v3938_v49  ;;  %2975 = vmatpush2.bf16.msra.mxu0 %v4645_v58 }
 0x2ad   : > { %2863 = vmatprep.subr.bf16.mxu1 %v3946_v59  ;;  %2976 = vmatprep.subr.bf16.mxu0 %v4649_v2 }
 0x2b0   : > { %2864 = vmatpush2.bf16.msra.mxu1 %v3944_v60  ;;  %2977 = vmatpush2.bf16.msra.mxu0 %v4653_v62  ;;  %v2188_v60 = vsub.s32 %v2185_v24, %v4371_v38 }
 0x2b1   : > { %2865 = vmatprep.subr.bf16.mxu1 %v3952_v63  ;;  %2978 = vmatprep.subr.bf16.mxu0 %v4657_v1 }
 0x2b2   : > { %2054 = vmatmul.mubr.bf16.gmra.mxu1 %v4536_v39  ;;  %2167 = vmatmul.mubr.bf16.gmra.mxu0 %v4536_v39  ;;  %v3950_v39 = vld [vmem:[#allocation7 + $0xa0] ss:$8 sps:$4 sm:$0xff]  }
 0x2b4   : > { %2866 = vmatpush2.bf16.msra.mxu1 %v3950_v39  ;;  %2979 = vmatpush2.bf16.msra.mxu0 %v4659_v53 }
 0x2b5   : > { %2867 = vmatprep.subr.bf16.mxu1 %v3958_v37  ;;  %2980 = vmatprep.subr.bf16.mxu0 %v4663_v47 }
 0x2b8   : > { %2868 = vmatpush2.bf16.msra.mxu1 %v3956_v5  ;;  %2981 = vmatpush2.bf16.msra.mxu0 %v4665_v6 }
 0x2b9   : > { %2869 = vmatprep.subr.bf16.mxu1 %v3964_v0  ;;  %2982 = vmatprep.subr.bf16.mxu0 %v4669_v10 }
 0x2bc   : > { %2870 = vmatpush2.bf16.msra.mxu1 %v3962_v31  ;;  %2983 = vmatpush2.bf16.msra.mxu0 %v4671_v4 }
 0x2bd   : > { %3518 = vmatprep.subr.bf16.mxu1 %v4559_v48  ;;  %v1115_v48 = vrot.slane %v1098_v43, %v4677_v35 }
 0x2fa   : > { %v1503_v12 = vpop.f32.mrf.mxu1  ;;  %v1544_v54 = vpop.f32.mrf.mxu0 }
 0x2fb   : > { %v1504_v46 = vadd.f32 %v1503_v12, %v1103_v28  ;;  %v1545_v49 = vadd.f32 %v1544_v54, %v1111_v19 }
 0x2fc   : > { %v1505_v3 = vpop.f32.mrf.mxu1  ;;  %v1546_v18 = vpop.f32.mrf.mxu0 }
 0x2fd   : > { %v1506_v55 = vadd.f32 %v1505_v3, %v1107_v13  ;;  %v1547_v27 = vadd.f32 %v1546_v18, %v1115_v48 }
 0x2fe   : > { %v1507_v23 = vpop.f32.mrf.mxu1  ;;  %v1548_v26 = vpop.f32.mrf.mxu0 }
 0x2ff   : > { %v2181_v59 = vcombine.low %v1504_v46, %v1506_v55  ;;  %v2182_v63 = vcombine.low %v1545_v49, %v1547_v27 }
 0x300   : > { %v1508_v7 = vpop.f32.mrf.mxu1  ;;  %v1549_v32 = vpop.f32.mrf.mxu0 }
 0x301   : > { %v2189_v39 = vrot.slane %v2181_v59, %v2188_v60  ;;  %v2196_v37 = vrot.slane %v2182_v63, %v2188_v60 }
 0x303   : > { %v2197_v5 = vcombine.low %v2189_v39, %v2196_v37  ;;  %v2198_v47 = vcombine.high %v2189_v39, %v2196_v37 }
 0x305   : > { %v4687_v0 = vrot.slane %v2197_v5, %v2188_v60 }
 0x307   : > { %v2218_v3 = vrot.slane %v4687_v0, %v4378_v42  ;;  %v2226_v12 = vrot.slane %v4687_v0, %v4384_v44  ;;  %v2222_v54 = vrot.slane %v4687_v0, %v4375_v41  ;;  %v2230_v38 = vrot.slane %v4687_v0, %v4677_v35 }
 0x33a   : > { %v1985_v31 = vpop.f32.mrf.mxu1  ;;  %v2098_v23 = vpop.f32.mrf.mxu0 }
 0x33b   : > { %v2295_v48 = vadd.f32 %v2218_v3, %v1985_v31  ;;  %v2297_v28 = vadd.f32 %v2226_v12, %v2098_v23 }
 0x33c   : > { %v1987_v26 = vpop.f32.mrf.mxu1  ;;  %v2100_v7 = vpop.f32.mrf.mxu0 }
 0x33d   : > { %v2296_v43 = vadd.f32 %v2222_v54, %v1987_v26  ;;  %v2298_v13 = vadd.f32 %v2230_v38, %v2100_v7  ;;  %v2359_v53 = vmax.f32 %v2295_v48, 0.0  ;;  %v2361_v26 = vmax.f32 %v2297_v28, 0.0 }
 0x33e   : > { %v1989_v18 = vpop.f32.mrf.mxu1  ;;  %v2102_v32 = vpop.f32.mrf.mxu0 }
 0x33f   : > { %v2299_v40 = vadd.f32 %v2218_v3, %v1989_v18  ;;  %v2301_v61 = vadd.f32 %v2226_v12, %v2102_v32  ;;  %v2360_v5 = vmax.f32 %v2296_v43, 0.0  ;;  %v2362_v4 = vmax.f32 %v2298_v13, 0.0 }
 0x340   : > { %v1991_v19 = vpop.f32.mrf.mxu1  ;;  %v2104_v55 = vpop.f32.mrf.mxu0  ;;  %v4697_v43 = vrot.slane %v2198_v47, %v2188_v60 }
 0x341   : > { %v2300_v24 = vadd.f32 %v2222_v54, %v1991_v19  ;;  %v2302_v27 = vadd.f32 %v2230_v38, %v2104_v55  ;;  %v2363_v46 = vmax.f32 %v2299_v40, 0.0  ;;  %v2365_v49 = vmax.f32 %v2301_v61, 0.0 }
 0x342   : > { %v1995_v59 = vpop.f32.mrf.mxu1  ;;  %v2108_v63 = vpop.f32.mrf.mxu0 }
 0x343   : > { %v2364_v10 = vmax.f32 %v2300_v24, 0.0  ;;  %v2366_v6 = vmax.f32 %v2302_v27, 0.0  ;;  %v2423_v23 = vpack.c.bf16 %v2363_v46, %v2359_v53  ;;  %v2425_v1 = vpack.c.bf16 %v2365_v49, %v2361_v26 }
 0x344   : > { %v1997_v7 = vpop.f32.mrf.mxu1  ;;  %v2110_v18 = vpop.f32.mrf.mxu0  ;;  %v2303_v13 = vadd.f32 %v2218_v3, %v1995_v59  ;;  %v2305_v39 = vadd.f32 %v2226_v12, %v2108_v63  ;;  %v2234_v49 = vrot.slane %v4697_v43, %v4378_v42  ;;  %v2242_v59 = vrot.slane %v4697_v43, %v4384_v44 }
 0x345   : > { %v2424_v32 = vpack.c.bf16 %v2364_v10, %v2360_v5  ;;  %v2426_v31 = vpack.c.bf16 %v2366_v6, %v2362_v4  ;;  %v2304_v62 = vadd.f32 %v2222_v54, %v1997_v7  ;;  %v2306_v40 = vadd.f32 %v2230_v38, %v2110_v18 }
 0x346   : > { %v1999_v19 = vpop.f32.mrf.mxu1  ;;  %v2112_v55 = vpop.f32.mrf.mxu0 }
 0x347   : > { %v2307_v61 = vadd.f32 %v2218_v3, %v1999_v19  ;;  %v2309_v2 = vadd.f32 %v2226_v12, %v2112_v55  ;;  %2871 = vmatprep.mubr.bf16.mxu1 %v2424_v32  ;;  %2984 = vmatprep.mubr.bf16.mxu0 %v2426_v31  ;;  %v2368_v27 = vmax.f32 %v2304_v62, 0.0  ;;  %v2370_v46 = vmax.f32 %v2306_v40, 0.0 }
 0x348   : > { %v2001_v37 = vpop.f32.mrf.mxu1  ;;  %v2114_v48 = vpop.f32.mrf.mxu0  ;;  %2872 = vmatmul.mubr.bf16.vlgmr.msra.gmra.mxu1 %v2423_v23  ;;  %2985 = vmatmul.mubr.bf16.vlgmr.msra.gmra.mxu0 %v2425_v1  ;;  %v2367_v3 = vmax.f32 %v2303_v13, 0.0  ;;  %v2369_v12 = vmax.f32 %v2305_v39, 0.0 }
 0x349   : > { %v2308_v10 = vadd.f32 %v2222_v54, %v2001_v37  ;;  %v2310_v6 = vadd.f32 %v2230_v38, %v2114_v48  ;;  %3534 = vmatpush1.bf16.msra.mxu1 %v4557_v8  ;;  %v2371_v53 = vmax.f32 %v2307_v61, 0.0  ;;  %v2373_v4 = vmax.f32 %v2309_v2, 0.0 }
 0x34a   : > { %v2005_v28 = vpop.f32.mrf.mxu1  ;;  %v2118_v24 = vpop.f32.mrf.mxu0  ;;  %3519 = vmatprep.subr.bf16.mxu1 %v4562_v56  ;;  %v2238_v54 = vrot.slane %v4697_v43, %v4375_v41  ;;  %v2246_v56 = vrot.slane %v4697_v43, %v4677_v35 }
 0x34b   : > { %v2372_v47 = vmax.f32 %v2308_v10, 0.0  ;;  %v2374_v60 = vmax.f32 %v2310_v6, 0.0  ;;  %v2427_v62 = vpack.c.bf16 %v2371_v53, %v2367_v3  ;;  %v2429_v63 = vpack.c.bf16 %v2373_v4, %v2369_v12 }
 0x34c   : > { %v2007_v1 = vpop.f32.mrf.mxu1  ;;  %v2120_v8 = vpop.f32.mrf.mxu0  ;;  %v2311_v23 = vadd.f32 %v2234_v49, %v2005_v28  ;;  %v2313_v19 = vadd.f32 %v2242_v59, %v2118_v24 }
 0x34d   : > { %v2428_v38 = vpack.c.bf16 %v2372_v47, %v2368_v27  ;;  %v2430_v2 = vpack.c.bf16 %v2374_v60, %v2370_v46  ;;  %3535 = vmatpush1.bf16.msra.mxu1 %v4565_v51  ;;  %v2312_v5 = vadd.f32 %v2238_v54, %v2007_v1  ;;  %v2314_v18 = vadd.f32 %v2246_v56, %v2120_v8 }
 0x34e   : > { %v2009_v26 = vpop.f32.mrf.mxu1  ;;  %v2122_v7 = vpop.f32.mrf.mxu0  ;;  %3520 = vmatprep.subr.bf16.mxu1 %v4569_v11  ;;  %v2375_v4 = vmax.f32 %v2311_v23, 0.0  ;;  %v2377_v28 = vmax.f32 %v2313_v19, 0.0 }
 0x34f   : > { %v2315_v32 = vadd.f32 %v2234_v49, %v2009_v26  ;;  %v2317_v31 = vadd.f32 %v2242_v59, %v2122_v7  ;;  %2881 = vmatprep.mubr.bf16.mxu1 %v2428_v38  ;;  %2994 = vmatprep.mubr.bf16.mxu0 %v2430_v2  ;;  %v2376_v11 = vmax.f32 %v2312_v5, 0.0  ;;  %v2378_v10 = vmax.f32 %v2314_v18, 0.0 }
 0x350   : > { %v2011_v55 = vpop.f32.mrf.mxu1  ;;  %v2124_v40 = vpop.f32.mrf.mxu0  ;;  %2882 = vmatmul.mubr.bf16.gmra.mxu1 %v2427_v62  ;;  %2995 = vmatmul.mubr.bf16.gmra.mxu0 %v2429_v63 }
 0x351   : > { %v2316_v61 = vadd.f32 %v2238_v54, %v2011_v55  ;;  %v2318_v51 = vadd.f32 %v2246_v56, %v2124_v40  ;;  %3536 = vmatpush1.bf16.msra.mxu1 %v4575_v14  ;;  %v2379_v13 = vmax.f32 %v2315_v32, 0.0  ;;  %v2381_v39 = vmax.f32 %v2317_v31, 0.0 }
 0x352   : > { %v2015_v37 = vpop.f32.mrf.mxu1  ;;  %v2128_v48 = vpop.f32.mrf.mxu0  ;;  %3521 = vmatprep.subr.bf16.mxu1 %v4578_v16 }
 0x353   : > { %v2380_v6 = vmax.f32 %v2316_v61, 0.0  ;;  %v2382_v53 = vmax.f32 %v2318_v51, 0.0  ;;  %v2431_v60 = vpack.c.bf16 %v2379_v13, %v2375_v4  ;;  %v2433_v14 = vpack.c.bf16 %v2381_v39, %v2377_v28 }
 0x354   : > { %v2017_v24 = vpop.f32.mrf.mxu1  ;;  %v2130_v27 = vpop.f32.mrf.mxu0  ;;  %v2319_v2 = vadd.f32 %v2234_v49, %v2015_v37  ;;  %v2321_v62 = vadd.f32 %v2242_v59, %v2128_v48 }
 0x355   : > { %v2432_v46 = vpack.c.bf16 %v2380_v6, %v2376_v11  ;;  %v2434_v47 = vpack.c.bf16 %v2382_v53, %v2378_v10  ;;  %3537 = vmatpush1.bf16.msra.mxu1 %v4581_v9  ;;  %v2320_v3 = vadd.f32 %v2238_v54, %v2017_v24  ;;  %v2322_v16 = vadd.f32 %v2246_v56, %v2130_v27 }
 0x356   : > { %v2019_v12 = vpop.f32.mrf.mxu1  ;;  %v2132_v1 = vpop.f32.mrf.mxu0  ;;  %3522 = vmatprep.subr.bf16.mxu1 %v4585_v20  ;;  %v2213_v9 = vcombine.high %v4687_v0, %v4687_v0  ;;  %v2383_v55 = vmax.f32 %v2319_v2, 0.0  ;;  %v2385_v40 = vmax.f32 %v2321_v62, 0.0 }
 0x357   : > { %v2323_v8 = vadd.f32 %v2234_v49, %v2019_v12  ;;  %v2325_v38 = vadd.f32 %v2242_v59, %v2132_v1  ;;  %2891 = vmatprep.mubr.bf16.mxu1 %v2432_v46  ;;  %3004 = vmatprep.mubr.bf16.mxu0 %v2434_v47  ;;  %v2384_v23 = vmax.f32 %v2320_v3, 0.0  ;;  %v2386_v49 = vmax.f32 %v2322_v16, 0.0 }
 0x358   : > { %v2021_v63 = vpop.f32.mrf.mxu1  ;;  %v2134_v5 = vpop.f32.mrf.mxu0  ;;  %2892 = vmatmul.mubr.bf16.gmra.mxu1 %v2431_v60  ;;  %3005 = vmatmul.mubr.bf16.gmra.mxu0 %v2433_v14  ;;  %v2250_v61 = vrot.slane %v2213_v9, %v4378_v42  ;;  %v2254_v0 = vrot.slane %v2213_v9, %v4375_v41  ;;  %v2258_v13 = vrot.slane %v2213_v9, %v4384_v44 }
 0x359   : > { %v2324_v26 = vadd.f32 %v2238_v54, %v2021_v63  ;;  %v2326_v7 = vadd.f32 %v2246_v56, %v2134_v5  ;;  %3538 = vmatpush1.bf16.msra.mxu1 %v4591_v25  ;;  %v2387_v18 = vmax.f32 %v2323_v8, 0.0  ;;  %v2389_v20 = vmax.f32 %v2325_v38, 0.0 }
 0x35a   : > { %v2025_v32 = vpop.f32.mrf.mxu1  ;;  %v2138_v31 = vpop.f32.mrf.mxu0  ;;  %3523 = vmatprep.subr.bf16.mxu1 %v4594_v29  ;;  %v2262_v39 = vrot.slane %v2213_v9, %v4677_v35 }
 0x35b   : > { %v2388_v59 = vmax.f32 %v2324_v26, 0.0  ;;  %v2390_v19 = vmax.f32 %v2326_v7, 0.0  ;;  %v2435_v29 = vpack.c.bf16 %v2387_v18, %v2383_v55  ;;  %v2437_v37 = vpack.c.bf16 %v2389_v20, %v2385_v40 }
 0x35c   : > { %v2027_v51 = vpop.f32.mrf.mxu1  ;;  %v2140_v54 = vpop.f32.mrf.mxu0  ;;  %v2327_v28 = vadd.f32 %v2250_v61, %v2025_v32  ;;  %v2329_v24 = vadd.f32 %v2258_v13, %v2138_v31  ;;  %v4732_v40 = vcombine.high %v4697_v43, %v4697_v43 }
 0x35d   : > { %v2436_v56 = vpack.c.bf16 %v2388_v59, %v2384_v23  ;;  %v2438_v25 = vpack.c.bf16 %v2390_v19, %v2386_v49  ;;  %3539 = vmatpush1.bf16.msra.mxu1 %v4597_v15  ;;  %v2328_v48 = vadd.f32 %v2254_v0, %v2027_v51  ;;  %v2330_v6 = vadd.f32 %v2262_v39, %v2140_v54 }
 0x35e   : > { %v2029_v11 = vpop.f32.mrf.mxu1  ;;  %v2142_v10 = vpop.f32.mrf.mxu0  ;;  %3524 = vmatprep.subr.bf16.mxu1 %v4601_v33  ;;  %v2391_v38 = vmax.f32 %v2327_v28, 0.0  ;;  %v2393_v2 = vmax.f32 %v2329_v24, 0.0  ;;  %v2266_v43 = vrot.slane %v4732_v40, %v4378_v42 }
 0x35f   : > { %v2331_v53 = vadd.f32 %v2250_v61, %v2029_v11  ;;  %v2333_v4 = vadd.f32 %v2258_v13, %v2142_v10  ;;  %2901 = vmatprep.mubr.bf16.mxu1 %v2436_v56  ;;  %3014 = vmatprep.mubr.bf16.mxu0 %v2438_v25  ;;  %v2392_v33 = vmax.f32 %v2328_v48, 0.0  ;;  %v2394_v1 = vmax.f32 %v2330_v6, 0.0 }
 0x360   : > { %v2031_v27 = vpop.f32.mrf.mxu1  ;;  %v2144_v46 = vpop.f32.mrf.mxu0  ;;  %2902 = vmatmul.mubr.bf16.gmra.mxu1 %v2435_v29  ;;  %3015 = vmatmul.mubr.bf16.gmra.mxu0 %v2437_v37  ;;  %v2270_v10 = vrot.slane %v4732_v40, %v4375_v41 }
 0x361   : > { %v2332_v47 = vadd.f32 %v2254_v0, %v2031_v27  ;;  %v2334_v15 = vadd.f32 %v2262_v39, %v2144_v46  ;;  %3540 = vmatpush1.bf16.msra.mxu1 %v4607_v36  ;;  %v2395_v60 = vmax.f32 %v2331_v53, 0.0  ;;  %v2397_v14 = vmax.f32 %v2333_v4, 0.0 }
 0x362   : > { %v2035_v3 = vpop.f32.mrf.mxu1  ;;  %v2148_v12 = vpop.f32.mrf.mxu0  ;;  %3525 = vmatprep.subr.bf16.mxu1 %v4610_v22 }
 0x363   : > { %v2396_v16 = vmax.f32 %v2332_v47, 0.0  ;;  %v2398_v8 = vmax.f32 %v2334_v15, 0.0  ;;  %v2439_v26 = vpack.c.bf16 %v2395_v60, %v2391_v38  ;;  %v2441_v36 = vpack.c.bf16 %v2397_v14, %v2393_v2 }
 0x364   : > { %v2037_v62 = vpop.f32.mrf.mxu1  ;;  %v2150_v63 = vpop.f32.mrf.mxu0  ;;  %v2335_v23 = vadd.f32 %v2250_v61, %v2035_v3  ;;  %v2337_v49 = vadd.f32 %v2258_v13, %v2148_v12 }
 0x365   : > { %v2440_v5 = vpack.c.bf16 %v2396_v16, %v2392_v33  ;;  %v2442_v9 = vpack.c.bf16 %v2398_v8, %v2394_v1  ;;  %3541 = vmatpush1.bf16.msra.mxu1 %v4613_v21  ;;  %v2336_v7 = vadd.f32 %v2254_v0, %v2037_v62  ;;  %v2338_v22 = vadd.f32 %v2262_v39, %v2150_v63  ;;  %v4864_v62 = vld [vmem:[#allocation12_spill] sm:$0xff] }
 0x366   : > { %v2039_v18 = vpop.f32.mrf.mxu1  ;;  %v2152_v20 = vpop.f32.mrf.mxu0  ;;  %3526 = vmatprep.subr.bf16.mxu1 %v4617_v50  ;;  %v2399_v37 = vmax.f32 %v2335_v23, 0.0  ;;  %v2278_v16 = vrot.slane %v4732_v40, %v4677_v35 }
 0x367   : > { %v2339_v32 = vadd.f32 %v2250_v61, %v2039_v18  ;;  %v2341_v31 = vadd.f32 %v2258_v13, %v2152_v20  ;;  %2911 = vmatprep.mubr.bf16.mxu1 %v2440_v5  ;;  %3024 = vmatprep.mubr.bf16.mxu0 %v2442_v9  ;;  %v2400_v61 = vmax.f32 %v2336_v7, 0.0  ;;  %v2402_v25 = vmax.f32 %v2338_v22, 0.0  ;;  %v4865_v18 = vld [vmem:[#allocation13_spill] sm:$0xff]  ;;  %v4866_v20 = vld [vmem:[#allocation14_spill] sm:$0xff] }
 0x368   : > { %v2041_v59 = vpop.f32.mrf.mxu1  ;;  %v2154_v19 = vpop.f32.mrf.mxu0  ;;  %2912 = vmatmul.mubr.bf16.gmra.mxu1 %v2439_v26  ;;  %3025 = vmatmul.mubr.bf16.gmra.mxu0 %v2441_v36 }
 0x369   : > { %v2340_v55 = vadd.f32 %v2254_v0, %v2041_v59  ;;  %v2342_v21 = vadd.f32 %v2262_v39, %v2154_v19  ;;  %3542 = vmatpush2.bf16.msra.mxu1 %v4623_v52  ;;  %v2403_v50 = vmax.f32 %v2339_v32, 0.0  ;;  %v2405_v51 = vmax.f32 %v2341_v31, 0.0 }
 0x36a   : > { %v2045_v54 = vpop.f32.mrf.mxu1  ;;  %v4734_v56 = vpop.f32.mrf.mxu0  ;;  %3527 = vmatprep.subr.bf16.mxu1 %v4626_v45  ;;  %v2401_v0 = vmax.f32 %v2337_v49, 0.0  ;;  %v2274_v31 = vrot.slane %v4732_v40, %v4384_v44  ;;  %v4870_v40 = vld [vmem:[#allocation18_spill] sm:$0xff] }
 0x36b   : > { %v2404_v13 = vmax.f32 %v2340_v55, 0.0  ;;  %v2406_v29 = vmax.f32 %v2342_v21, 0.0  ;;  %v2443_v6 = vpack.c.bf16 %v2403_v50, %v2399_v37  ;;  %v2343_v27 = vadd.f32 %v2266_v43, %v2045_v54  ;;  %v4867_v55 = vld [vmem:[#allocation15_spill] sm:$0xff] }
 0x36c   : > { %v2047_v39 = vpop.f32.mrf.mxu1  ;;  %v2160_v48 = vpop.f32.mrf.mxu0  ;;  %v2445_v45 = vpack.c.bf16 %v2405_v51, %v2401_v0  ;;  %v4868_v51 = vld [vmem:[#allocation16_spill] sm:$0xff] }
 0x36d   : > { %v2444_v52 = vpack.c.bf16 %v2404_v13, %v2400_v61  ;;  %v2446_v11 = vpack.c.bf16 %v2406_v29, %v2402_v25  ;;  %3543 = vmatpush2.bf16.msra.mxu1 %v4631_v57  ;;  %v2344_v28 = vadd.f32 %v2270_v10, %v2047_v39  ;;  %v2346_v36 = vadd.f32 %v2278_v16, %v2160_v48  ;;  %v4869_v29 = vld [vmem:[#allocation17_spill] sm:$0xff]  ;;  %v4871_v48 = vld [vmem:[#allocation19_spill] sm:$0xff] }
 0x36e   : > { %v2049_v53 = vpop.f32.mrf.mxu1  ;;  %v2162_v4 = vpop.f32.mrf.mxu0  ;;  %3528 = vmatprep.subr.bf16.mxu1 %v4635_v30  ;;  %v2407_v30 = vmax.f32 %v2343_v27, 0.0  ;;  %v2345_v25 = vadd.f32 %v2274_v31, %v4734_v56 }
 0x36f   : > { %v2347_v24 = vadd.f32 %v2266_v43, %v2049_v53  ;;  %2921 = vmatprep.mubr.bf16.mxu1 %v2444_v52  ;;  %3034 = vmatprep.mubr.bf16.mxu0 %v2446_v11  ;;  %v2408_v3 = vmax.f32 %v2344_v28, 0.0  ;;  %v2410_v59 = vmax.f32 %v2346_v36, 0.0  ;;  %v2349_v21 = vadd.f32 %v2274_v31, %v2162_v4 }
 0x370   : > { %v2051_v46 = vpop.f32.mrf.mxu1  ;;  %v2164_v47 = vpop.f32.mrf.mxu0  ;;  %2922 = vmatmul.mubr.bf16.gmra.mxu1 %v2443_v6  ;;  %3035 = vmatmul.mubr.bf16.gmra.mxu0 %v2445_v45  ;;  %v2409_v0 = vmax.f32 %v2345_v25, 0.0 }
 0x371   : > { %v2348_v15 = vadd.f32 %v2270_v10, %v2051_v46  ;;  %3544 = vmatpush2.bf16.msra.mxu1 %v4639_v17  ;;  %v2411_v60 = vmax.f32 %v2347_v24, 0.0  ;;  %v2350_v17 = vadd.f32 %v2278_v16, %v2164_v47  ;;  %v2413_v44 = vmax.f32 %v2349_v21, 0.0 }
 0x372   : > { %v2055_v57 = vpop.f32.mrf.mxu1  ;;  %v2168_v14 = vpop.f32.mrf.mxu0  ;;  %3529 = vmatprep.subr.bf16.mxu1 %v4642_v34 }
 0x373   : > { %v2412_v12 = vmax.f32 %v2348_v15, 0.0  ;;  %v2447_v38 = vpack.c.bf16 %v2411_v60, %v2407_v30  ;;  %v2351_v34 = vadd.f32 %v2266_v43, %v2055_v57  ;;  %v2449_v52 = vpack.c.bf16 %v2413_v44, %v2409_v0 }
 0x374   : > { %v2057_v33 = vpop.f32.mrf.mxu1  ;;  %v2170_v1 = vpop.f32.mrf.mxu0 }
 0x375   : > { %v2448_v8 = vpack.c.bf16 %v2412_v12, %v2408_v3  ;;  %3545 = vmatpush2.bf16.msra.mxu1 %v4645_v58  ;;  %v2352_v63 = vadd.f32 %v2270_v10, %v2057_v33  ;;  %v2414_v58 = vmax.f32 %v2350_v17, 0.0  ;;  %v2415_v23 = vmax.f32 %v2351_v34, 0.0 }
 0x376   : > { %v2059_v2 = vpop.f32.mrf.mxu1  ;;  %3530 = vmatprep.subr.bf16.mxu1 %v4864_v62  ;;  %v2172_v9 = vpop.f32.mrf.mxu0  ;;  %v2354_v13 = vadd.f32 %v2278_v16, %v2170_v1 }
 0x377   : > { %v2355_v5 = vadd.f32 %v2266_v43, %v2059_v2  ;;  %2931 = vmatprep.mubr.bf16.mxu1 %v2448_v8  ;;  %v2416_v22 = vmax.f32 %v2352_v63, 0.0  ;;  %v2450_v54 = vpack.c.bf16 %v2414_v58, %v2410_v59  ;;  %v2357_v11 = vadd.f32 %v2274_v31, %v2172_v9 }
 0x378   : > { %v2061_v26 = vpop.f32.mrf.mxu1  ;;  %2932 = vmatmul.mubr.bf16.gmra.mxu1 %v2447_v38  ;;  %v2174_v49 = vpop.f32.mrf.mxu0  ;;  %v2418_v39 = vmax.f32 %v2354_v13, 0.0 }
 0x379   : > { %v2356_v7 = vadd.f32 %v2270_v10, %v2061_v26  ;;  %3546 = vmatpush2.bf16.msra.mxu1 %v4865_v18  ;;  %v2419_v35 = vmax.f32 %v2355_v5, 0.0  ;;  %v2358_v61 = vadd.f32 %v2278_v16, %v2174_v49  ;;  %v2353_v10 = vadd.f32 %v2274_v31, %v2168_v14 }
 0x37a   : > { %3531 = vmatprep.subr.bf16.mxu1 %v4866_v20  ;;  %v2421_v56 = vmax.f32 %v2357_v11, 0.0 }
 0x37b   : > { %v2420_v32 = vmax.f32 %v2356_v7, 0.0  ;;  %v2451_v50 = vpack.c.bf16 %v2419_v35, %v2415_v23  ;;  %v2422_v37 = vmax.f32 %v2358_v61, 0.0  ;;  %v2417_v6 = vmax.f32 %v2353_v10, 0.0  ;;  %v3137_v61 = vld [vmem:[%s4836_s8] sm:$0x3] }
 0x37d   : > { %v2452_v19 = vpack.c.bf16 %v2420_v32, %v2416_v22  ;;  %3547 = vmatpush2.bf16.msra.mxu1 %v4867_v55  ;;  %v2454_v43 = vpack.c.bf16 %v2422_v37, %v2418_v39  ;;  %v2453_v45 = vpack.c.bf16 %v2421_v56, %v2417_v6  ;;  %v4763_v39 = vrot.slane %v3137_v61, %v4378_v42 }
 0x37e   : > { %3532 = vmatprep.subr.bf16.mxu1 %v4868_v51 }
 0x37f   : > { %2941 = vmatprep.mubr.bf16.mxu1 %v2452_v19 }
 0x380   : > { %2942 = vmatmul.mubr.bf16.gmra.mxu1 %v2451_v50 }
 0x381   : > { %3548 = vmatpush2.bf16.msra.mxu1 %v4869_v29  ;;  %3044 = vmatprep.mubr.bf16.mxu1 %v2450_v54 }
 0x382   : > { %3533 = vmatprep.subr.bf16.mxu1 %v4870_v40 }
 0x385   : > { %3549 = vmatpush2.bf16.msra.mxu1 %v4871_v48 }
 0x388   : > { %3045 = vmatmul.mubr.bf16.vlgmr.msra.gmra.mxu1 %v2449_v52  ;;  %v4766_v52 = vrot.slane %v3137_v61, %v4375_v41 }
 0x389   : > { %3054 = vmatprep.mubr.bf16.mxu1 %v2454_v43 }
 0x390   : > { %3055 = vmatmul.mubr.bf16.gmra.mxu1 %v2453_v45 }
 0x408   : > { %v2873_v53 = vpop.f32.mrf.mxu1  ;;  %v2986_v4 = vpop.f32.mrf.mxu0 }
 0x409   : > { %v2987_v47 = vadd.f32 %v2986_v4, %v2873_v53 }
 0x40a   : > { %v2875_v28 = vpop.f32.mrf.mxu1  ;;  %v2988_v24 = vpop.f32.mrf.mxu0 }
 0x40b   : > { %v2989_v3 = vadd.f32 %v2988_v24, %v2875_v28 }
 0x40c   : > { %v2877_v27 = vpop.f32.mrf.mxu1  ;;  %v2990_v46 = vpop.f32.mrf.mxu0 }
 0x40d   : > { %v2991_v15 = vadd.f32 %v2990_v46, %v2877_v27 }
 0x40e   : > { %v2879_v60 = vpop.f32.mrf.mxu1  ;;  %v2992_v57 = vpop.f32.mrf.mxu0 }
 0x40f   : > { %v3065_v12 = vmax.f32 %v2987_v47, %v2991_v15  ;;  %v2993_v30 = vadd.f32 %v2992_v57, %v2879_v60 }
 0x410   : > { %v2883_v14 = vpop.f32.mrf.mxu1  ;;  %v2996_v33 = vpop.f32.mrf.mxu0 }
 0x411   : > { %v3074_v1 = vmax.f32 %v2989_v3, %v2993_v30  ;;  %v2997_v16 = vadd.f32 %v2996_v33, %v2883_v14 }
 0x412   : > { %v2885_v8 = vpop.f32.mrf.mxu1  ;;  %v2998_v38 = vpop.f32.mrf.mxu0 }
 0x413   : > { %v3066_v2 = vmax.f32 %v3065_v12, %v2997_v16  ;;  %v2999_v62 = vadd.f32 %v2998_v38, %v2885_v8 }
 0x414   : > { %v2887_v17 = vpop.f32.mrf.mxu1  ;;  %v3000_v63 = vpop.f32.mrf.mxu0 }
 0x415   : > { %v3075_v5 = vmax.f32 %v3074_v1, %v2999_v62  ;;  %v3001_v34 = vadd.f32 %v3000_v63, %v2887_v17 }
 0x416   : > { %v2889_v9 = vpop.f32.mrf.mxu1  ;;  %v3002_v26 = vpop.f32.mrf.mxu0 }
 0x417   : > { %v3067_v36 = vmax.f32 %v3066_v2, %v3001_v34  ;;  %v3003_v7 = vadd.f32 %v3002_v26, %v2889_v9 }
 0x418   : > { %v2893_v18 = vpop.f32.mrf.mxu1  ;;  %v3006_v35 = vpop.f32.mrf.mxu0 }
 0x419   : > { %v3068_v20 = vrot.slane %v3067_v36, 4  ;;  %v3076_v58 = vmax.f32 %v3075_v5, %v3003_v7  ;;  %v3007_v2 = vadd.f32 %v3006_v35, %v2893_v18 }
 0x41a   : > { %v2895_v22 = vpop.f32.mrf.mxu1  ;;  %v3008_v32 = vpop.f32.mrf.mxu0 }
 0x41b   : > { %v3069_v31 = vmax.f32 %v3067_v36, %v3068_v20  ;;  %v3077_v23 = vrot.slane %v3076_v58, 4  ;;  %v3009_v33 = vadd.f32 %v3008_v32, %v2895_v22 }
 0x41c   : > { %v2897_v49 = vpop.f32.mrf.mxu1  ;;  %v3010_v59 = vpop.f32.mrf.mxu0 }
 0x41d   : > { %v3070_v19 = vrot.slane %v3069_v31, 2  ;;  %v3078_v55 = vmax.f32 %v3076_v58, %v3077_v23  ;;  %v3011_v1 = vadd.f32 %v3010_v59, %v2897_v49 }
 0x41e   : > { %v2899_v21 = vpop.f32.mrf.mxu1  ;;  %v3012_v50 = vpop.f32.mrf.mxu0 }
 0x41f   : > { %v3071_v51 = vmax.f32 %v3069_v31, %v3070_v19  ;;  %v3079_v54 = vrot.slane %v3078_v55, 2  ;;  %v3013_v30 = vadd.f32 %v3012_v50, %v2899_v21  ;;  %v3083_v9 = vmax.f32 %v3007_v2, %v3011_v1 }
 0x420   : > { %v2903_v25 = vpop.f32.mrf.mxu1  ;;  %v3016_v13 = vpop.f32.mrf.mxu0 }
 0x421   : > { %v3072_v29 = vrot.slane %v3071_v51, 1  ;;  %v3080_v44 = vmax.f32 %v3078_v55, %v3079_v54  ;;  %v3092_v62 = vmax.f32 %v3009_v33, %v3013_v30  ;;  %v3017_v17 = vadd.f32 %v3016_v13, %v2903_v25 }
 0x422   : > { %v2905_v40 = vpop.f32.mrf.mxu1  ;;  %v3018_v37 = vpop.f32.mrf.mxu0 }
 0x423   : > { %v3073_v0 = vmax.f32 %v3071_v51, %v3072_v29  ;;  %v3081_v48 = vrot.slane %v3080_v44, 1  ;;  %v3019_v16 = vadd.f32 %v3018_v37, %v2905_v40  ;;  %v3084_v19 = vmax.f32 %v3083_v9, %v3017_v17 }
 0x424   : > { %v2907_v11 = vpop.f32.mrf.mxu1  ;;  %v3020_v43 = vpop.f32.mrf.mxu0 }
 0x425   : > { %v3082_v10 = vmax.f32 %v3080_v44, %v3081_v48  ;;  %v4769_v45 = vadd.f32 %v4763_v39, %v3073_v0  ;;  %v3093_v26 = vmax.f32 %v3092_v62, %v3019_v16  ;;  %v3021_v36 = vadd.f32 %v3020_v43, %v2907_v11 }
 0x426   : > { %v2909_v56 = vpop.f32.mrf.mxu1  ;;  %v3022_v6 = vpop.f32.mrf.mxu0 }
 0x427   : > { %v4772_v53 = vadd.f32 %v4766_v52, %v3082_v10  ;;  %v3023_v63 = vadd.f32 %v3022_v6, %v2909_v56  ;;  %v3085_v35 = vmax.f32 %v3084_v19, %v3021_v36 }
 0x428   : > { %v2913_v4 = vpop.f32.mrf.mxu1  ;;  %v3026_v28 = vpop.f32.mrf.mxu0 }
 0x429   : > { %v3165_v42 = vcombine.low %v4769_v45, %v4772_v53  ;;  %v3094_v22 = vmax.f32 %v3093_v26, %v3023_v63  ;;  %v3027_v49 = vadd.f32 %v3026_v28, %v2913_v4  ;;  %v3086_v44 = vrot.slane %v3085_v35, 4 }
 0x42a   : > { %v2915_v24 = vpop.f32.mrf.mxu1  ;;  %v3028_v27 = vpop.f32.mrf.mxu0 }
 0x42b   : > { %v3029_v58 = vadd.f32 %v3028_v27, %v2915_v24  ;;  %v3095_v61 = vrot.slane %v3094_v22, 4  ;;  %v3087_v43 = vmax.f32 %v3085_v35, %v3086_v44 }
 0x42c   : > { %v2917_v41 = vpop.f32.mrf.mxu1  ;;  %v3030_v46 = vpop.f32.mrf.mxu0 }
 0x42d   : > { %v3031_v31 = vadd.f32 %v3030_v46, %v2917_v41  ;;  %v3096_v0 = vmax.f32 %v3094_v22, %v3095_v61  ;;  %v3088_v24 = vrot.slane %v3087_v43, 2 }
 0x42e   : > { %v2919_v47 = vpop.f32.mrf.mxu1  ;;  %v3032_v15 = vpop.f32.mrf.mxu0 }
 0x42f   : > { %v3033_v34 = vadd.f32 %v3032_v15, %v2919_v47  ;;  %v3101_v50 = vmax.f32 %v3027_v49, %v3031_v31  ;;  %v3097_v6 = vrot.slane %v3096_v0, 2 }
 0x430   : > { %v2923_v60 = vpop.f32.mrf.mxu1  ;;  %v3036_v57 = vpop.f32.mrf.mxu0 }
 0x431   : > { %v3110_v59 = vmax.f32 %v3029_v58, %v3033_v34  ;;  %v3037_v55 = vadd.f32 %v3036_v57, %v2923_v60  ;;  %v3098_v46 = vmax.f32 %v3096_v0, %v3097_v6  ;;  %v3089_v60 = vmax.f32 %v3087_v43, %v3088_v24 }
 0x432   : > { %v2925_v3 = vpop.f32.mrf.mxu1  ;;  %v3038_v12 = vpop.f32.mrf.mxu0 }
 0x433   : > { %v3039_v23 = vadd.f32 %v3038_v12, %v2925_v3  ;;  %v3102_v13 = vmax.f32 %v3101_v50, %v3037_v55  ;;  %v3099_v30 = vrot.slane %v3098_v46, 1 }
 0x434   : > { %v2927_v14 = vpop.f32.mrf.mxu1  ;;  %v3040_v8 = vpop.f32.mrf.mxu0 }
 0x435   : > { %v3111_v51 = vmax.f32 %v3110_v59, %v3039_v23  ;;  %v3041_v54 = vadd.f32 %v3040_v8, %v2927_v14  ;;  %v3100_v9 = vmax.f32 %v3098_v46, %v3099_v30 }
 0x436   : > { %v2929_v38 = vpop.f32.mrf.mxu1  ;;  %v3042_v7 = vpop.f32.mrf.mxu0 }
 0x437   : > { %v3043_v18 = vadd.f32 %v3042_v7, %v2929_v38  ;;  %v3103_v37 = vmax.f32 %v3102_v13, %v3041_v54  ;;  %v3090_v38 = vrot.slane %v3089_v60, 1  ;;  %v3152_v59 = vadd.f32 %v4766_v52, %v3100_v9 }
 0x438   : > { %v2933_v5 = vpop.f32.mrf.mxu1 }
 0x439   : > { %v3112_v29 = vmax.f32 %v3111_v51, %v3043_v18  ;;  %v3104_v56 = vrot.slane %v3103_v37, 4  ;;  %v3091_v23 = vmax.f32 %v3089_v60, %v3090_v38 }
 0x43a   : > { %v2935_v20 = vpop.f32.mrf.mxu1 }
 0x43b   : > { %v3113_v11 = vrot.slane %v3112_v29, 4  ;;  %v3105_v41 = vmax.f32 %v3103_v37, %v3104_v56 }
 0x43c   : > { %v2937_v32 = vpop.f32.mrf.mxu1 }
 0x43d   : > { %v3114_v28 = vmax.f32 %v3112_v29, %v3113_v11  ;;  %v3106_v3 = vrot.slane %v3105_v41, 2 }
 0x43e   : > { %v2939_v21 = vpop.f32.mrf.mxu1 }
 0x43f   : > { %v3115_v15 = vrot.slane %v3114_v28, 2  ;;  %v3107_v62 = vmax.f32 %v3105_v41, %v3106_v3 }
 0x440   : > { %v2943_v25 = vpop.f32.mrf.mxu1 }
 0x441   : > { %v3116_v33 = vmax.f32 %v3114_v28, %v3115_v15  ;;  %v3108_v22 = vrot.slane %v3107_v62, 1 }
 0x442   : > { %v2945_v40 = vpop.f32.mrf.mxu1 }
 0x443   : > { %v3117_v36 = vrot.slane %v3116_v33, 1 }
 0x444   : > { %v2947_v48 = vpop.f32.mrf.mxu1 }
 0x445   : > { %v3118_v55 = vmax.f32 %v3116_v33, %v3117_v36 }
 0x446   : > { %v2949_v10 = vpop.f32.mrf.mxu1 }
 0x447   : > { %v3154_v61 = vadd.f32 %v4766_v52, %v3118_v55 }
 0x448   : > { %v3046_v4 = vpop.f32.mrf.mxu1 }
 0x449   : > { %v3047_v1 = vadd.f32 %v3046_v4, %v2933_v5 }
 0x44a   : > { %v3048_v27 = vpop.f32.mrf.mxu1 }
 0x44b   : > { %v3049_v17 = vadd.f32 %v3048_v27, %v2935_v20  ;;  %v3151_v20 = vadd.f32 %v4763_v39, %v3091_v23 }
 0x44c   : > { %v3050_v47 = vpop.f32.mrf.mxu1 }
 0x44d   : > { %v3051_v12 = vadd.f32 %v3050_v47, %v2937_v32  ;;  %v3166_v54 = vcombine.low %v3151_v20, %v3152_v59 }
 0x44e   : > { %v3052_v57 = vpop.f32.mrf.mxu1 }
 0x44f   : > { %v3053_v16 = vadd.f32 %v3052_v57, %v2939_v21  ;;  %v3119_v63 = vmax.f32 %v3047_v1, %v3051_v12  ;;  %v3109_v21 = vmax.f32 %v3107_v62, %v3108_v22  ;;  %v3169_v37 = vrot.slane %v3166_v54, 7 }
 0x450   : > { %v3056_v14 = vpop.f32.mrf.mxu1 }
 0x451   : > { %v3057_v8 = vadd.f32 %v3056_v14, %v2943_v25  ;;  %v3128_v7 = vmax.f32 %v3049_v17, %v3053_v16  ;;  %v3153_v29 = vadd.f32 %v4763_v39, %v3109_v21  ;;  %v3170_v56 = vsel %vm1136_vm0, %v3169_v37, %v3165_v42 }
 0x452   : > { %v3058_v2 = vpop.f32.mrf.mxu1  ;;  %v3172_v27 = vsel %vm3171_vm3, %v3169_v37, %v3170_v56 }
 0x453   : > { %v3059_v34 = vadd.f32 %v3058_v2, %v2945_v40  ;;  %v3120_v58 = vmax.f32 %v3119_v63, %v3057_v8  ;;  %v3167_v0 = vcombine.low %v3153_v29, %v3154_v61 }
 0x454   : > { %v3060_v26 = vpop.f32.mrf.mxu1 }
 0x455   : > { %v3061_v31 = vadd.f32 %v3060_v26, %v2947_v48  ;;  %v3129_v32 = vmax.f32 %v3128_v7, %v3059_v34  ;;  %v3173_v6 = vrot.slane %v3167_v0, 6 }
 0x456   : > { %v3062_v19 = vpop.f32.mrf.mxu1 }
 0x457   : > { %v3121_v49 = vmax.f32 %v3120_v58, %v3061_v31  ;;  %v3063_v5 = vadd.f32 %v3062_v19, %v2949_v10  ;;  %v3174_v46 = vsel %vm1138_vm1, %v3173_v6, %v3172_v27 }
 0x458   : > { %v3176_v45 = vsel %vm3175_vm4, %v3173_v6, %v3174_v46 }
 0x459   : > { %v3122_v18 = vrot.slane %v3121_v49, 4  ;;  %v3130_v35 = vmax.f32 %v3129_v32, %v3063_v5 }
 0x45b   : > { %v3123_v50 = vmax.f32 %v3121_v49, %v3122_v18  ;;  %v3131_v51 = vrot.slane %v3130_v35, 4 }
 0x45d   : > { %v3124_v25 = vrot.slane %v3123_v50, 2  ;;  %v3132_v13 = vmax.f32 %v3130_v35, %v3131_v51 }
 0x45f   : > { %v3125_v44 = vmax.f32 %v3123_v50, %v3124_v25  ;;  %v3133_v40 = vrot.slane %v3132_v13, 2 }
 0x461   : > { %v3126_v48 = vrot.slane %v3125_v44, 1  ;;  %v3134_v11 = vmax.f32 %v3132_v13, %v3133_v40 }
 0x463   : > { %v3127_v43 = vmax.f32 %v3125_v44, %v3126_v48  ;;  %v3135_v10 = vrot.slane %v3134_v11, 1 }
 0x465   : > { %v3136_v4 = vmax.f32 %v3134_v11, %v3135_v10  ;;  %v3155_v28 = vadd.f32 %v4763_v39, %v3127_v43 }
 0x467   : > { %v3156_v24 = vadd.f32 %v4766_v52, %v3136_v4 }
 0x469   : > { %v3168_v41 = vcombine.low %v3155_v28, %v3156_v24 }
 0x46b   : > { %v3177_v47 = vrot.slane %v3168_v41, 5 }
 0x46d   : > { %v3178_v53 = vsel %vm1140_vm2, %v3177_v47, %v3176_v45 }
 0x46e   : > { %v3180_v39 = vsel %vm3179_vm5, %v3177_v47, %v3178_v53 }
 0x46f   : > { %3182 = vst [vmem:[%s372_s26] sm:$0xff] %v3180_v39 }
 0x470   : > { %4059 = shalt.err (!%p4056_p0)
}
 0x471   : > { %s4060_s24 = scalar_lea.hbm %s4793_s29, 128  ;;  %s4064_s26 = scalar_lea.hbm %s4837_s9, 256 }
 0x472   : > { %p4061_p6 = scmp.ne.s32.totalorder %s4793_s29, %s4060_s24  ;;  %p4065_p5 = scmp.lt.s32.totalorder %s4793_s29, %s4837_s9 }
 0x473   : > { %p4066_p1 = scmp.lt.s32.totalorder %s4064_s26, %s4060_s24 }
 0x474   : > { %p4062_p9 = pnand %p4061_p6, %p4872_p3 }
 0x475   : > { %p4067_p10 = por %p4066_p1, %p4065_p5 }
 0x476   : > { %p4063_p13 = pneg %p4062_p9 }
 0x478   : > { %p4068_p12 = pnand %p4067_p10, %p4063_p13 }
 0x47a   : > { %4071 = shalt.err (!%p4068_p12)
}
 0x47b   : > { %3562 = dma.vmem_to_hbm [thread:$0]  (%p4872_p3), %s3199_s14, 128, %s4793_s29, %s3184_s23  }
 0x47c PF: > { %p3584_p2 = scmp.ge.s32.totalorder %s4114_s12, 2  ;;  %s3210_s17 = sand.u32 1, %s4102_s30  }
 0x47d   : > { %p4873_p4 = scmp.ne.s32.totalorder %s4849_s20, 0  ;;  %s3211_s13 = scalar_lea.sflag [#allocation4], %s3210_s17 }
 0x47f   : > { %p3575_p7 = pnand %p3584_p2, %p4873_p4 }
 0x481   : > { %p3576_p8 = pneg %p3575_p7 }
 0x483   : > { %4097 = dma.done.wait (%p3576_p8), %s3211_s13, 128  }
 0x484   : > { %4099 = vsyncadd (%p3576_p8), %s3211_s13, 4294967168  ;;  %p21_p11 = scmp.ge.s32.totalorder %s4203_s15, 4   ;;  %s4874_s30 = smov %s4106_s10 }
 0x485   : > { %s4875_s10 = smov %s4110_s11  ;;  %s4876_s11 = smov %s4214_s18 }
 0x486   : > { %s4877_s12 = smov %s4203_s15  ;;  %23 = sbr.rel (!%p21_p11) target bundleno = 5 (0x5), region = 104 }
 0x48b   :  { %3216 = vsyncpa [#allocation3], 1 }
 0x48c   :  { %3218 = vsyncpa [#allocation3 + $0x1], 1 }
 0x48d   :  { %3219 = vsyncpa [#allocation6], 1 }
 0x48e   :  { %3220 = vsyncpa [#allocation4], 1 }
 0x48f   :  { %3222 = vsyncpa [#allocation4 + $0x1], 1 }

</bundles_post_ra>
